<compile_context>
chip_gen: v5e
topology: v5e:2x2
jax: 0.10.0
libtpu: 0.0.40
codegen_flags: <defaults>
</compile_context>

<pallas_src>
import jax
import jax.numpy as jnp
from jax.experimental import pallas as pl
from jax.experimental.pallas import tpu as pltpu

LANES = 128   # lane padding for the fc feature vectors / logits
K = 5         # all convs are 5x5, stride 1, VALID


# ---------------------------------------------------------------------------
# Host-side weight layout prep (all traceable jnp ops)
# ---------------------------------------------------------------------------
def _pick_tb(batch):
    """Batch tile per grid step; keep the grid length >= 2 when possible."""
    for tb in (8, 4, 2):
        if batch % tb == 0 and batch // tb >= 2:
            return tb
    return 1


def _conv_row_weights(w_oihw, w_in, pool):
    """Block-Toeplitz per-kernel-row weights for the (H, C*W) activation layout.

    conv_out[a, co*OW + b] = sum_i  X[a+i, :] @ Wr[i][:, co*OW + b]
    where Wr[i][ci*w_in + w, co*OW + b] = w[co, ci, i, w-b] for 0 <= w-b < 5.
    If pool=True the width-wise even/odd column selection of the 2x2 max-pool
    is folded in and two weight stacks (even, odd) are returned.
    """
    c_out, c_in, kh, kw = w_oihw.shape
    ow = w_in - kw + 1
    eyes = jnp.stack(
        [jnp.eye(w_in, ow, k=-j, dtype=jnp.float32) for j in range(kw)])     # (kw, w_in, ow)
    bw = jnp.einsum("ocij,jwb->icwob", w_oihw.astype(jnp.float32), eyes)     # (kh, ci, w, co, b)
    bw = bw.reshape(kh, c_in * w_in, c_out, ow)
    if pool:
        half = ow // 2
        return (bw[..., 0::2].reshape(kh, c_in * w_in, c_out * half),
                bw[..., 1::2].reshape(kh, c_in * w_in, c_out * half))
    return bw.reshape(kh, c_in * w_in, c_out * ow)


def _pool_rows(n):
    """Even / odd row selection matrices (n//2, n) for height pooling on MXU."""
    e = jnp.eye(n, dtype=jnp.float32)
    return e[0::2], e[1::2]


def _pad_vec(v, n):
    v = v.astype(jnp.float32)
    return jnp.pad(v, (0, n - v.shape[0]))[None, :]


# ---------------------------------------------------------------------------
# Fused forward kernel (TB samples per grid step)
# ---------------------------------------------------------------------------
def _make_kernel(tb_size):
    def kernel(x_ref,
               w1e_ref, w1o_ref, p1e_ref, p1o_ref, b1_ref,
               w2e_ref, w2o_ref, p2e_ref, p2o_ref, b2_ref,
               w3_ref, b3_ref, wf1_ref, bf1_ref, wf2_ref, bf2_ref,
               o_ref):

        def mm(a, b):
            return jnp.dot(a, b, preferred_element_type=jnp.float32)

        def conv_pool(h, we_ref, wo_ref, pe_ref, po_ref, b_ref, oh):
            # h: (H_in, C_in*W_in) -> tanh(maxpool2x2(conv5x5(h) + bias))
            acc_e = mm(h[0:oh, :], we_ref[0])
            acc_o = mm(h[0:oh, :], wo_ref[0])
            for i in range(1, K):                       # statically unrolled taps
                hi = h[i:i + oh, :]
                acc_e = acc_e + mm(hi, we_ref[i])
                acc_o = acc_o + mm(hi, wo_ref[i])
            wmax = jnp.maximum(acc_e, acc_o)            # width-pooled (folded in W)
            hmax = jnp.maximum(mm(pe_ref[...], wmax),   # height-pool via selection dots
                               mm(po_ref[...], wmax))
            return jnp.tanh(hmax + b_ref[...])

        feats = []
        for tb in range(tb_size):                       # static batch-tile unroll
            xs = x_ref[tb]                              # (32, C0*32) lane-dense slab
            h1 = conv_pool(xs, w1e_ref, w1o_ref, p1e_ref, p1o_ref, b1_ref, 28)
            h2 = conv_pool(h1, w2e_ref, w2o_ref, p2e_ref, p2o_ref, b2_ref, 10)
            a3 = mm(h2[0:1, :], w3_ref[0])              # conv3 -> (1, 128)
            for i in range(1, K):
                a3 = a3 + mm(h2[i:i + 1, :], w3_ref[i])
            feats.append(a3)

        f = feats[0] if tb_size == 1 else jnp.concatenate(feats, axis=0)
        f = jnp.tanh(f + b3_ref[...])                              # (TB, 128)
        g = jnp.tanh(mm(f, wf1_ref[...]) + bf1_ref[...])           # fc1, M = TB
        o_ref[0] = mm(g, wf2_ref[...]) + bf2_ref[...]              # fc2, M = TB

    return kernel


# ---------------------------------------------------------------------------
# Host wrapper: one-time layout prep + single fused pallas_call
# ---------------------------------------------------------------------------
def adj_lenet_forward(x, params):
    """x: (B, 3, 32, 32) NCHW float32 -> logits (B, num_classes)."""
    B, c_in, H, W = x.shape
    assert (H, W) == (32, 32), "LeNet-5 geometry requires 32x32 inputs"
    assert c_in == params["conv1_w"].shape[1]
    c1 = params["conv1_w"].shape[0]
    c2 = params["conv2_w"].shape[0]
    c3 = params["conv3_w"].shape[0]
    fc1_out = params["fc1_w"].shape[1]
    n_cls = params["fc2_w"].shape[1]
    assert max(c3, fc1_out, n_cls) <= LANES

    tb = _pick_tb(B)
    grid = B // tb

    # Activations live in a lane-dense (H, C*W) layout inside the kernel.
    x_l = jnp.transpose(x.astype(jnp.float32), (0, 2, 1, 3)).reshape(B, H, c_in * W)

    w1e, w1o = _conv_row_weights(params["conv1_w"], 32, pool=True)   # (5, 3*32, c1*14)
    w2e, w2o = _conv_row_weights(params["conv2_w"], 14, pool=True)   # (5, c1*14, c2*5)
    w3 = _conv_row_weights(params["conv3_w"], 5, pool=False)         # (5, c2*5, c3)
    w3 = jnp.pad(w3, ((0, 0), (0, 0), (0, LANES - c3)))
    p1e, p1o = _pool_rows(28)
    p2e, p2o = _pool_rows(10)
    b1r = jnp.repeat(params["conv1_b"].astype(jnp.float32), 14)[None, :]   # (1, c1*14)
    b2r = jnp.repeat(params["conv2_b"].astype(jnp.float32), 5)[None, :]    # (1, c2*5)
    b3r = _pad_vec(params["conv3_b"], LANES)
    wf1 = jnp.zeros((LANES, LANES), jnp.float32).at[:c3, :fc1_out].set(
        params["fc1_w"].astype(jnp.float32))
    bf1 = _pad_vec(params["fc1_b"], LANES)
    wf2 = jnp.zeros((LANES, LANES), jnp.float32).at[:fc1_out, :n_cls].set(
        params["fc2_w"].astype(jnp.float32))
    bf2 = _pad_vec(params["fc2_b"], LANES)

    operands = (x_l, w1e, w1o, p1e, p1o, b1r,
                w2e, w2o, p2e, p2o, b2r,
                w3, b3r, wf1, bf1, wf2, bf2)

    def _resident(a):
        nd = a.ndim
        return pl.BlockSpec(a.shape, lambda b, _n=nd: (0,) * _n)

    in_specs = ([pl.BlockSpec((tb, H, c_in * W), lambda b: (b, 0, 0))]
                + [_resident(a) for a in operands[1:]])

    grid_spec = pltpu.PrefetchScalarGridSpec(
        num_scalar_prefetch=0,
        grid=(grid,),
        in_specs=in_specs,
        out_specs=pl.BlockSpec((1, tb, LANES), lambda b: (b, 0, 0)),
    )

    out = pl.pallas_call(
        _make_kernel(tb),
        out_shape=jax.ShapeDtypeStruct((grid, tb, LANES), jnp.float32),
        grid_spec=grid_spec,
        compiler_params=pltpu.CompilerParams(
            dimension_semantics=("parallel",)),
    )(*operands)

    return out.reshape(B, LANES)[:, :n_cls]   # drop the lane padding of the logits


# ---------------------------------------------------------------------------
# Deterministic parameter init (PyTorch-default-style uniform bounds)
# ---------------------------------------------------------------------------
def init_params(key, num_classes=10, k1=6, k2=16, k3=120):
    keys = jax.random.split(key, 10)

    def u(k, shape, fan_in):
        bound = 1.0 / float(fan_in) ** 0.5
        return jax.random.uniform(k, shape, jnp.float32, -bound, bound)

    return {
        "conv1_w": u(keys[0], (k1, 3, 5, 5), 3 * 25),
        "conv1_b": u(keys[1], (k1,), 3 * 25),
        "conv2_w": u(keys[2], (k2, k1, 5, 5), k1 * 25),
        "conv2_b": u(keys[3], (k2,), k1 * 25),
        "conv3_w": u(keys[4], (k3, k2, 5, 5), k2 * 25),
        "conv3_b": u(keys[5], (k3,), k2 * 25),
        # FC weights stored transposed: (in_features, out_features)
        "fc1_w": u(keys[6], (k3, 84), k3),
        "fc1_b": u(keys[7], (84,), k3),
        "fc2_w": u(keys[8], (84, num_classes), 84),
        "fc2_b": u(keys[9], (num_classes,), 84),
    }


# ---------------------------------------------------------------------------
# Pure-JAX reference (for correctness check)
# ---------------------------------------------------------------------------
def reference_forward(x, params):
    def conv(x, w, b):
        y = jax.lax.conv_general_dilated(
            x, w, (1, 1), "VALID", dimension_numbers=("NCHW", "OIHW", "NCHW"))
        return jnp.tanh(y + b[None, :, None, None])

    def pool(x):
        return jax.lax.reduce_window(
            x, -jnp.inf, jax.lax.max, (1, 1, 2, 2), (1, 1, 2, 2), "VALID")

    h = pool(conv(x, params["conv1_w"], params["conv1_b"]))
    h = pool(conv(h, params["conv2_w"], params["conv2_b"]))
    h = conv(h, params["conv3_w"], params["conv3_b"])
    h = h.reshape(h.shape[0], -1)
    h = jnp.tanh(h @ params["fc1_w"] + params["fc1_b"])
    return h @ params["fc2_w"] + params["fc2_b"]


if __name__ == "__main__":
    key = jax.random.PRNGKey(0)
    pkey, xkey = jax.random.split(key)
    params = init_params(pkey)
    # LeNet-5 geometry requires 32x32 spatial so conv3 yields 1x1; batch=2.
    x = jax.random.normal(xkey, (2, 3, 32, 32), jnp.float32)

    fwd = jax.jit(adj_lenet_forward)
    out = jax.block_until_ready(fwd(x, params))
    ref = reference_forward(x, params)

    assert out.shape == (2, 10), out.shape
    assert bool(jnp.all(jnp.isfinite(out)))
    # Tolerance covers MXU-vs-XLA default f32 matmul/conv rounding differences
    # (both sides may run reduced-precision passes with different groupings).
    assert jnp.allclose(out, ref, rtol=3e-2, atol=3e-2), (
        f"max abs diff = {float(jnp.max(jnp.abs(out - ref)))}")
    print("KERNEL_OK")
</pallas_src>

<mosaic_0001>
module attributes {stable_mosaic.version = 11 : i64} {
  func.func @kernel(%arg0: i32, %arg1: memref<1x32x96xf32, #tpu.memory_space<vmem>>, %arg2: memref<5x96x84xf32, #tpu.memory_space<vmem>>, %arg3: memref<5x96x84xf32, #tpu.memory_space<vmem>>, %arg4: memref<14x28xf32, #tpu.memory_space<vmem>>, %arg5: memref<14x28xf32, #tpu.memory_space<vmem>>, %arg6: memref<1x84xf32, #tpu.memory_space<vmem>>, %arg7: memref<5x84x80xf32, #tpu.memory_space<vmem>>, %arg8: memref<5x84x80xf32, #tpu.memory_space<vmem>>, %arg9: memref<5x10xf32, #tpu.memory_space<vmem>>, %arg10: memref<5x10xf32, #tpu.memory_space<vmem>>, %arg11: memref<1x80xf32, #tpu.memory_space<vmem>>, %arg12: memref<5x80x128xf32, #tpu.memory_space<vmem>>, %arg13: memref<1x128xf32, #tpu.memory_space<vmem>>, %arg14: memref<128x128xf32, #tpu.memory_space<vmem>>, %arg15: memref<1x128xf32, #tpu.memory_space<vmem>>, %arg16: memref<128x128xf32, #tpu.memory_space<vmem>>, %arg17: memref<1x128xf32, #tpu.memory_space<vmem>>, %arg18: memref<1x1x128xf32, #tpu.memory_space<vmem>>) attributes {dimension_semantics = [#tpu.dimension_semantics<parallel>], iteration_bounds = array<i64: 2>, scalar_prefetch = 0 : i64, scratch_operands = 0 : i64, tpu.core_type = #tpu.core_type<tc>, window_params = [{transform_indices = @transform_0, window_bounds = array<i64: 1, 32, 96>}, {pipeline_mode = #tpu.pipeline_mode<synchronous>, transform_indices = @transform_1, window_bounds = array<i64: 5, 96, 84>}, {pipeline_mode = #tpu.pipeline_mode<synchronous>, transform_indices = @transform_2, window_bounds = array<i64: 5, 96, 84>}, {pipeline_mode = #tpu.pipeline_mode<synchronous>, transform_indices = @transform_3, window_bounds = array<i64: 14, 28>}, {pipeline_mode = #tpu.pipeline_mode<synchronous>, transform_indices = @transform_4, window_bounds = array<i64: 14, 28>}, {pipeline_mode = #tpu.pipeline_mode<synchronous>, transform_indices = @transform_5, window_bounds = array<i64: 1, 84>}, {pipeline_mode = #tpu.pipeline_mode<synchronous>, transform_indices = @transform_6, window_bounds = array<i64: 5, 84, 80>}, {pipeline_mode = #tpu.pipeline_mode<synchronous>, transform_indices = @transform_7, window_bounds = array<i64: 5, 84, 80>}, {pipeline_mode = #tpu.pipeline_mode<synchronous>, transform_indices = @transform_8, window_bounds = array<i64: 5, 10>}, {pipeline_mode = #tpu.pipeline_mode<synchronous>, transform_indices = @transform_9, window_bounds = array<i64: 5, 10>}, {pipeline_mode = #tpu.pipeline_mode<synchronous>, transform_indices = @transform_10, window_bounds = array<i64: 1, 80>}, {pipeline_mode = #tpu.pipeline_mode<synchronous>, transform_indices = @transform_11, window_bounds = array<i64: 5, 80, 128>}, {pipeline_mode = #tpu.pipeline_mode<synchronous>, transform_indices = @transform_12, window_bounds = array<i64: 1, 128>}, {pipeline_mode = #tpu.pipeline_mode<synchronous>, transform_indices = @transform_13, window_bounds = array<i64: 128, 128>}, {pipeline_mode = #tpu.pipeline_mode<synchronous>, transform_indices = @transform_14, window_bounds = array<i64: 1, 128>}, {pipeline_mode = #tpu.pipeline_mode<synchronous>, transform_indices = @transform_15, window_bounds = array<i64: 128, 128>}, {pipeline_mode = #tpu.pipeline_mode<synchronous>, transform_indices = @transform_16, window_bounds = array<i64: 1, 128>}, {transform_indices = @transform_17, window_bounds = array<i64: 1, 1, 128>}]} {
    %c0 = arith.constant 0 : index
    %c0_0 = arith.constant 0 : index
    %c0_1 = arith.constant 0 : index
    %0 = vector.load %arg1[%c0, %c0_0, %c0_1] : memref<1x32x96xf32, #tpu.memory_space<vmem>>, vector<1x32x96xf32>
    %1 = vector.shape_cast %0 : vector<1x32x96xf32> to vector<32x96xf32>
    %2 = vector.extract_strided_slice %1 {offsets = [0, 0], sizes = [28, 96], strides = [1, 1]} : vector<32x96xf32> to vector<28x96xf32>
    %c0_2 = arith.constant 0 : index
    %c0_3 = arith.constant 0 : index
    %c0_4 = arith.constant 0 : index
    %3 = vector.load %arg2[%c0_2, %c0_3, %c0_4] : memref<5x96x84xf32, #tpu.memory_space<vmem>>, vector<1x96x84xf32>
    %4 = vector.shape_cast %3 : vector<1x96x84xf32> to vector<96x84xf32>
    %cst = arith.constant dense<0.000000e+00> : vector<28x84xf32>
    %5 = tpu.matmul %2, %4, %cst {dimension_numbers = #tpu.dot_dimension_numbers<[1], [0], [0], [1], [0, 0, 1, 1], [], []>} : vector<28x96xf32>, vector<96x84xf32>, vector<28x84xf32> -> vector<28x84xf32>
    %6 = vector.extract_strided_slice %1 {offsets = [0, 0], sizes = [28, 96], strides = [1, 1]} : vector<32x96xf32> to vector<28x96xf32>
    %c0_5 = arith.constant 0 : index
    %c0_6 = arith.constant 0 : index
    %c0_7 = arith.constant 0 : index
    %7 = vector.load %arg3[%c0_5, %c0_6, %c0_7] : memref<5x96x84xf32, #tpu.memory_space<vmem>>, vector<1x96x84xf32>
    %8 = vector.shape_cast %7 : vector<1x96x84xf32> to vector<96x84xf32>
    %cst_8 = arith.constant dense<0.000000e+00> : vector<28x84xf32>
    %9 = tpu.matmul %6, %8, %cst_8 {dimension_numbers = #tpu.dot_dimension_numbers<[1], [0], [0], [1], [0, 0, 1, 1], [], []>} : vector<28x96xf32>, vector<96x84xf32>, vector<28x84xf32> -> vector<28x84xf32>
    %10 = vector.extract_strided_slice %1 {offsets = [1, 0], sizes = [28, 96], strides = [1, 1]} : vector<32x96xf32> to vector<28x96xf32>
    %c1 = arith.constant 1 : index
    %c0_9 = arith.constant 0 : index
    %c0_10 = arith.constant 0 : index
    %11 = vector.load %arg2[%c1, %c0_9, %c0_10] : memref<5x96x84xf32, #tpu.memory_space<vmem>>, vector<1x96x84xf32>
    %12 = vector.shape_cast %11 : vector<1x96x84xf32> to vector<96x84xf32>
    %cst_11 = arith.constant dense<0.000000e+00> : vector<28x84xf32>
    %13 = tpu.matmul %10, %12, %cst_11 {dimension_numbers = #tpu.dot_dimension_numbers<[1], [0], [0], [1], [0, 0, 1, 1], [], []>} : vector<28x96xf32>, vector<96x84xf32>, vector<28x84xf32> -> vector<28x84xf32>
    %14 = arith.addf %5, %13 : vector<28x84xf32>
    %c1_12 = arith.constant 1 : index
    %c0_13 = arith.constant 0 : index
    %c0_14 = arith.constant 0 : index
    %15 = vector.load %arg3[%c1_12, %c0_13, %c0_14] : memref<5x96x84xf32, #tpu.memory_space<vmem>>, vector<1x96x84xf32>
    %16 = vector.shape_cast %15 : vector<1x96x84xf32> to vector<96x84xf32>
    %cst_15 = arith.constant dense<0.000000e+00> : vector<28x84xf32>
    %17 = tpu.matmul %10, %16, %cst_15 {dimension_numbers = #tpu.dot_dimension_numbers<[1], [0], [0], [1], [0, 0, 1, 1], [], []>} : vector<28x96xf32>, vector<96x84xf32>, vector<28x84xf32> -> vector<28x84xf32>
    %18 = arith.addf %9, %17 : vector<28x84xf32>
    %19 = vector.extract_strided_slice %1 {offsets = [2, 0], sizes = [28, 96], strides = [1, 1]} : vector<32x96xf32> to vector<28x96xf32>
    %c2 = arith.constant 2 : index
    %c0_16 = arith.constant 0 : index
    %c0_17 = arith.constant 0 : index
    %20 = vector.load %arg2[%c2, %c0_16, %c0_17] : memref<5x96x84xf32, #tpu.memory_space<vmem>>, vector<1x96x84xf32>
    %21 = vector.shape_cast %20 : vector<1x96x84xf32> to vector<96x84xf32>
    %cst_18 = arith.constant dense<0.000000e+00> : vector<28x84xf32>
    %22 = tpu.matmul %19, %21, %cst_18 {dimension_numbers = #tpu.dot_dimension_numbers<[1], [0], [0], [1], [0, 0, 1, 1], [], []>} : vector<28x96xf32>, vector<96x84xf32>, vector<28x84xf32> -> vector<28x84xf32>
    %23 = arith.addf %14, %22 : vector<28x84xf32>
    %c2_19 = arith.constant 2 : index
    %c0_20 = arith.constant 0 : index
    %c0_21 = arith.constant 0 : index
    %24 = vector.load %arg3[%c2_19, %c0_20, %c0_21] : memref<5x96x84xf32, #tpu.memory_space<vmem>>, vector<1x96x84xf32>
    %25 = vector.shape_cast %24 : vector<1x96x84xf32> to vector<96x84xf32>
    %cst_22 = arith.constant dense<0.000000e+00> : vector<28x84xf32>
    %26 = tpu.matmul %19, %25, %cst_22 {dimension_numbers = #tpu.dot_dimension_numbers<[1], [0], [0], [1], [0, 0, 1, 1], [], []>} : vector<28x96xf32>, vector<96x84xf32>, vector<28x84xf32> -> vector<28x84xf32>
    %27 = arith.addf %18, %26 : vector<28x84xf32>
    %28 = vector.extract_strided_slice %1 {offsets = [3, 0], sizes = [28, 96], strides = [1, 1]} : vector<32x96xf32> to vector<28x96xf32>
    %c3 = arith.constant 3 : index
    %c0_23 = arith.constant 0 : index
    %c0_24 = arith.constant 0 : index
    %29 = vector.load %arg2[%c3, %c0_23, %c0_24] : memref<5x96x84xf32, #tpu.memory_space<vmem>>, vector<1x96x84xf32>
    %30 = vector.shape_cast %29 : vector<1x96x84xf32> to vector<96x84xf32>
    %cst_25 = arith.constant dense<0.000000e+00> : vector<28x84xf32>
    %31 = tpu.matmul %28, %30, %cst_25 {dimension_numbers = #tpu.dot_dimension_numbers<[1], [0], [0], [1], [0, 0, 1, 1], [], []>} : vector<28x96xf32>, vector<96x84xf32>, vector<28x84xf32> -> vector<28x84xf32>
    %32 = arith.addf %23, %31 : vector<28x84xf32>
    %c3_26 = arith.constant 3 : index
    %c0_27 = arith.constant 0 : index
    %c0_28 = arith.constant 0 : index
    %33 = vector.load %arg3[%c3_26, %c0_27, %c0_28] : memref<5x96x84xf32, #tpu.memory_space<vmem>>, vector<1x96x84xf32>
    %34 = vector.shape_cast %33 : vector<1x96x84xf32> to vector<96x84xf32>
    %cst_29 = arith.constant dense<0.000000e+00> : vector<28x84xf32>
    %35 = tpu.matmul %28, %34, %cst_29 {dimension_numbers = #tpu.dot_dimension_numbers<[1], [0], [0], [1], [0, 0, 1, 1], [], []>} : vector<28x96xf32>, vector<96x84xf32>, vector<28x84xf32> -> vector<28x84xf32>
    %36 = arith.addf %27, %35 : vector<28x84xf32>
    %37 = vector.extract_strided_slice %1 {offsets = [4, 0], sizes = [28, 96], strides = [1, 1]} : vector<32x96xf32> to vector<28x96xf32>
    %c4 = arith.constant 4 : index
    %c0_30 = arith.constant 0 : index
    %c0_31 = arith.constant 0 : index
    %38 = vector.load %arg2[%c4, %c0_30, %c0_31] : memref<5x96x84xf32, #tpu.memory_space<vmem>>, vector<1x96x84xf32>
    %39 = vector.shape_cast %38 : vector<1x96x84xf32> to vector<96x84xf32>
    %cst_32 = arith.constant dense<0.000000e+00> : vector<28x84xf32>
    %40 = tpu.matmul %37, %39, %cst_32 {dimension_numbers = #tpu.dot_dimension_numbers<[1], [0], [0], [1], [0, 0, 1, 1], [], []>} : vector<28x96xf32>, vector<96x84xf32>, vector<28x84xf32> -> vector<28x84xf32>
    %41 = arith.addf %32, %40 : vector<28x84xf32>
    %c4_33 = arith.constant 4 : index
    %c0_34 = arith.constant 0 : index
    %c0_35 = arith.constant 0 : index
    %42 = vector.load %arg3[%c4_33, %c0_34, %c0_35] : memref<5x96x84xf32, #tpu.memory_space<vmem>>, vector<1x96x84xf32>
    %43 = vector.shape_cast %42 : vector<1x96x84xf32> to vector<96x84xf32>
    %cst_36 = arith.constant dense<0.000000e+00> : vector<28x84xf32>
    %44 = tpu.matmul %37, %43, %cst_36 {dimension_numbers = #tpu.dot_dimension_numbers<[1], [0], [0], [1], [0, 0, 1, 1], [], []>} : vector<28x96xf32>, vector<96x84xf32>, vector<28x84xf32> -> vector<28x84xf32>
    %45 = arith.addf %36, %44 : vector<28x84xf32>
    %46 = arith.maximumf %41, %45 : vector<28x84xf32>
    %c0_37 = arith.constant 0 : index
    %c0_38 = arith.constant 0 : index
    %47 = vector.load %arg4[%c0_37, %c0_38] : memref<14x28xf32, #tpu.memory_space<vmem>>, vector<14x28xf32>
    %cst_39 = arith.constant dense<0.000000e+00> : vector<14x84xf32>
    %48 = tpu.matmul %47, %46, %cst_39 {dimension_numbers = #tpu.dot_dimension_numbers<[1], [0], [0], [1], [0, 0, 1, 1], [], []>} : vector<14x28xf32>, vector<28x84xf32>, vector<14x84xf32> -> vector<14x84xf32>
    %c0_40 = arith.constant 0 : index
    %c0_41 = arith.constant 0 : index
    %49 = vector.load %arg5[%c0_40, %c0_41] : memref<14x28xf32, #tpu.memory_space<vmem>>, vector<14x28xf32>
    %cst_42 = arith.constant dense<0.000000e+00> : vector<14x84xf32>
    %50 = tpu.matmul %49, %46, %cst_42 {dimension_numbers = #tpu.dot_dimension_numbers<[1], [0], [0], [1], [0, 0, 1, 1], [], []>} : vector<14x28xf32>, vector<28x84xf32>, vector<14x84xf32> -> vector<14x84xf32>
    %51 = arith.maximumf %48, %50 : vector<14x84xf32>
    %c0_43 = arith.constant 0 : index
    %c0_44 = arith.constant 0 : index
    %52 = vector.load %arg6[%c0_43, %c0_44] : memref<1x84xf32, #tpu.memory_space<vmem>>, vector<1x84xf32>
    %53 = vector.broadcast %52 : vector<1x84xf32> to vector<14x84xf32>
    %54 = arith.addf %51, %53 : vector<14x84xf32>
    %55 = math.tanh %54 : vector<14x84xf32>
    %56 = vector.extract_strided_slice %55 {offsets = [0, 0], sizes = [10, 84], strides = [1, 1]} : vector<14x84xf32> to vector<10x84xf32>
    %c0_45 = arith.constant 0 : index
    %c0_46 = arith.constant 0 : index
    %c0_47 = arith.constant 0 : index
    %57 = vector.load %arg7[%c0_45, %c0_46, %c0_47] : memref<5x84x80xf32, #tpu.memory_space<vmem>>, vector<1x84x80xf32>
    %58 = vector.shape_cast %57 : vector<1x84x80xf32> to vector<84x80xf32>
    %cst_48 = arith.constant dense<0.000000e+00> : vector<10x80xf32>
    %59 = tpu.matmul %56, %58, %cst_48 {dimension_numbers = #tpu.dot_dimension_numbers<[1], [0], [0], [1], [0, 0, 1, 1], [], []>} : vector<10x84xf32>, vector<84x80xf32>, vector<10x80xf32> -> vector<10x80xf32>
    %60 = vector.extract_strided_slice %55 {offsets = [0, 0], sizes = [10, 84], strides = [1, 1]} : vector<14x84xf32> to vector<10x84xf32>
    %c0_49 = arith.constant 0 : index
    %c0_50 = arith.constant 0 : index
    %c0_51 = arith.constant 0 : index
    %61 = vector.load %arg8[%c0_49, %c0_50, %c0_51] : memref<5x84x80xf32, #tpu.memory_space<vmem>>, vector<1x84x80xf32>
    %62 = vector.shape_cast %61 : vector<1x84x80xf32> to vector<84x80xf32>
    %cst_52 = arith.constant dense<0.000000e+00> : vector<10x80xf32>
    %63 = tpu.matmul %60, %62, %cst_52 {dimension_numbers = #tpu.dot_dimension_numbers<[1], [0], [0], [1], [0, 0, 1, 1], [], []>} : vector<10x84xf32>, vector<84x80xf32>, vector<10x80xf32> -> vector<10x80xf32>
    %64 = vector.extract_strided_slice %55 {offsets = [1, 0], sizes = [10, 84], strides = [1, 1]} : vector<14x84xf32> to vector<10x84xf32>
    %c1_53 = arith.constant 1 : index
    %c0_54 = arith.constant 0 : index
    %c0_55 = arith.constant 0 : index
    %65 = vector.load %arg7[%c1_53, %c0_54, %c0_55] : memref<5x84x80xf32, #tpu.memory_space<vmem>>, vector<1x84x80xf32>
    %66 = vector.shape_cast %65 : vector<1x84x80xf32> to vector<84x80xf32>
    %cst_56 = arith.constant dense<0.000000e+00> : vector<10x80xf32>
    %67 = tpu.matmul %64, %66, %cst_56 {dimension_numbers = #tpu.dot_dimension_numbers<[1], [0], [0], [1], [0, 0, 1, 1], [], []>} : vector<10x84xf32>, vector<84x80xf32>, vector<10x80xf32> -> vector<10x80xf32>
    %68 = arith.addf %59, %67 : vector<10x80xf32>
    %c1_57 = arith.constant 1 : index
    %c0_58 = arith.constant 0 : index
    %c0_59 = arith.constant 0 : index
    %69 = vector.load %arg8[%c1_57, %c0_58, %c0_59] : memref<5x84x80xf32, #tpu.memory_space<vmem>>, vector<1x84x80xf32>
    %70 = vector.shape_cast %69 : vector<1x84x80xf32> to vector<84x80xf32>
    %cst_60 = arith.constant dense<0.000000e+00> : vector<10x80xf32>
    %71 = tpu.matmul %64, %70, %cst_60 {dimension_numbers = #tpu.dot_dimension_numbers<[1], [0], [0], [1], [0, 0, 1, 1], [], []>} : vector<10x84xf32>, vector<84x80xf32>, vector<10x80xf32> -> vector<10x80xf32>
    %72 = arith.addf %63, %71 : vector<10x80xf32>
    %73 = vector.extract_strided_slice %55 {offsets = [2, 0], sizes = [10, 84], strides = [1, 1]} : vector<14x84xf32> to vector<10x84xf32>
    %c2_61 = arith.constant 2 : index
    %c0_62 = arith.constant 0 : index
    %c0_63 = arith.constant 0 : index
    %74 = vector.load %arg7[%c2_61, %c0_62, %c0_63] : memref<5x84x80xf32, #tpu.memory_space<vmem>>, vector<1x84x80xf32>
    %75 = vector.shape_cast %74 : vector<1x84x80xf32> to vector<84x80xf32>
    %cst_64 = arith.constant dense<0.000000e+00> : vector<10x80xf32>
    %76 = tpu.matmul %73, %75, %cst_64 {dimension_numbers = #tpu.dot_dimension_numbers<[1], [0], [0], [1], [0, 0, 1, 1], [], []>} : vector<10x84xf32>, vector<84x80xf32>, vector<10x80xf32> -> vector<10x80xf32>
    %77 = arith.addf %68, %76 : vector<10x80xf32>
    %c2_65 = arith.constant 2 : index
    %c0_66 = arith.constant 0 : index
    %c0_67 = arith.constant 0 : index
    %78 = vector.load %arg8[%c2_65, %c0_66, %c0_67] : memref<5x84x80xf32, #tpu.memory_space<vmem>>, vector<1x84x80xf32>
    %79 = vector.shape_cast %78 : vector<1x84x80xf32> to vector<84x80xf32>
    %cst_68 = arith.constant dense<0.000000e+00> : vector<10x80xf32>
    %80 = tpu.matmul %73, %79, %cst_68 {dimension_numbers = #tpu.dot_dimension_numbers<[1], [0], [0], [1], [0, 0, 1, 1], [], []>} : vector<10x84xf32>, vector<84x80xf32>, vector<10x80xf32> -> vector<10x80xf32>
    %81 = arith.addf %72, %80 : vector<10x80xf32>
    %82 = vector.extract_strided_slice %55 {offsets = [3, 0], sizes = [10, 84], strides = [1, 1]} : vector<14x84xf32> to vector<10x84xf32>
    %c3_69 = arith.constant 3 : index
    %c0_70 = arith.constant 0 : index
    %c0_71 = arith.constant 0 : index
    %83 = vector.load %arg7[%c3_69, %c0_70, %c0_71] : memref<5x84x80xf32, #tpu.memory_space<vmem>>, vector<1x84x80xf32>
    %84 = vector.shape_cast %83 : vector<1x84x80xf32> to vector<84x80xf32>
    %cst_72 = arith.constant dense<0.000000e+00> : vector<10x80xf32>
    %85 = tpu.matmul %82, %84, %cst_72 {dimension_numbers = #tpu.dot_dimension_numbers<[1], [0], [0], [1], [0, 0, 1, 1], [], []>} : vector<10x84xf32>, vector<84x80xf32>, vector<10x80xf32> -> vector<10x80xf32>
    %86 = arith.addf %77, %85 : vector<10x80xf32>
    %c3_73 = arith.constant 3 : index
    %c0_74 = arith.constant 0 : index
    %c0_75 = arith.constant 0 : index
    %87 = vector.load %arg8[%c3_73, %c0_74, %c0_75] : memref<5x84x80xf32, #tpu.memory_space<vmem>>, vector<1x84x80xf32>
    %88 = vector.shape_cast %87 : vector<1x84x80xf32> to vector<84x80xf32>
    %cst_76 = arith.constant dense<0.000000e+00> : vector<10x80xf32>
    %89 = tpu.matmul %82, %88, %cst_76 {dimension_numbers = #tpu.dot_dimension_numbers<[1], [0], [0], [1], [0, 0, 1, 1], [], []>} : vector<10x84xf32>, vector<84x80xf32>, vector<10x80xf32> -> vector<10x80xf32>
    %90 = arith.addf %81, %89 : vector<10x80xf32>
    %91 = vector.extract_strided_slice %55 {offsets = [4, 0], sizes = [10, 84], strides = [1, 1]} : vector<14x84xf32> to vector<10x84xf32>
    %c4_77 = arith.constant 4 : index
    %c0_78 = arith.constant 0 : index
    %c0_79 = arith.constant 0 : index
    %92 = vector.load %arg7[%c4_77, %c0_78, %c0_79] : memref<5x84x80xf32, #tpu.memory_space<vmem>>, vector<1x84x80xf32>
    %93 = vector.shape_cast %92 : vector<1x84x80xf32> to vector<84x80xf32>
    %cst_80 = arith.constant dense<0.000000e+00> : vector<10x80xf32>
    %94 = tpu.matmul %91, %93, %cst_80 {dimension_numbers = #tpu.dot_dimension_numbers<[1], [0], [0], [1], [0, 0, 1, 1], [], []>} : vector<10x84xf32>, vector<84x80xf32>, vector<10x80xf32> -> vector<10x80xf32>
    %95 = arith.addf %86, %94 : vector<10x80xf32>
    %c4_81 = arith.constant 4 : index
    %c0_82 = arith.constant 0 : index
    %c0_83 = arith.constant 0 : index
    %96 = vector.load %arg8[%c4_81, %c0_82, %c0_83] : memref<5x84x80xf32, #tpu.memory_space<vmem>>, vector<1x84x80xf32>
    %97 = vector.shape_cast %96 : vector<1x84x80xf32> to vector<84x80xf32>
    %cst_84 = arith.constant dense<0.000000e+00> : vector<10x80xf32>
    %98 = tpu.matmul %91, %97, %cst_84 {dimension_numbers = #tpu.dot_dimension_numbers<[1], [0], [0], [1], [0, 0, 1, 1], [], []>} : vector<10x84xf32>, vector<84x80xf32>, vector<10x80xf32> -> vector<10x80xf32>
    %99 = arith.addf %90, %98 : vector<10x80xf32>
    %100 = arith.maximumf %95, %99 : vector<10x80xf32>
    %c0_85 = arith.constant 0 : index
    %c0_86 = arith.constant 0 : index
    %101 = vector.load %arg9[%c0_85, %c0_86] : memref<5x10xf32, #tpu.memory_space<vmem>>, vector<5x10xf32>
    %cst_87 = arith.constant dense<0.000000e+00> : vector<5x80xf32>
    %102 = tpu.matmul %101, %100, %cst_87 {dimension_numbers = #tpu.dot_dimension_numbers<[1], [0], [0], [1], [0, 0, 1, 1], [], []>} : vector<5x10xf32>, vector<10x80xf32>, vector<5x80xf32> -> vector<5x80xf32>
    %c0_88 = arith.constant 0 : index
    %c0_89 = arith.constant 0 : index
    %103 = vector.load %arg10[%c0_88, %c0_89] : memref<5x10xf32, #tpu.memory_space<vmem>>, vector<5x10xf32>
    %cst_90 = arith.constant dense<0.000000e+00> : vector<5x80xf32>
    %104 = tpu.matmul %103, %100, %cst_90 {dimension_numbers = #tpu.dot_dimension_numbers<[1], [0], [0], [1], [0, 0, 1, 1], [], []>} : vector<5x10xf32>, vector<10x80xf32>, vector<5x80xf32> -> vector<5x80xf32>
    %105 = arith.maximumf %102, %104 : vector<5x80xf32>
    %c0_91 = arith.constant 0 : index
    %c0_92 = arith.constant 0 : index
    %106 = vector.load %arg11[%c0_91, %c0_92] : memref<1x80xf32, #tpu.memory_space<vmem>>, vector<1x80xf32>
    %107 = vector.broadcast %106 : vector<1x80xf32> to vector<5x80xf32>
    %108 = arith.addf %105, %107 : vector<5x80xf32>
    %109 = math.tanh %108 : vector<5x80xf32>
    %110 = vector.extract_strided_slice %109 {offsets = [0, 0], sizes = [1, 80], strides = [1, 1]} : vector<5x80xf32> to vector<1x80xf32>
    %c0_93 = arith.constant 0 : index
    %c0_94 = arith.constant 0 : index
    %c0_95 = arith.constant 0 : index
    %111 = vector.load %arg12[%c0_93, %c0_94, %c0_95] : memref<5x80x128xf32, #tpu.memory_space<vmem>>, vector<1x80x128xf32>
    %112 = vector.shape_cast %111 : vector<1x80x128xf32> to vector<80x128xf32>
    %cst_96 = arith.constant dense<0.000000e+00> : vector<1x128xf32>
    %113 = tpu.matmul %110, %112, %cst_96 {dimension_numbers = #tpu.dot_dimension_numbers<[1], [0], [0], [1], [0, 0, 1, 1], [], []>} : vector<1x80xf32>, vector<80x128xf32>, vector<1x128xf32> -> vector<1x128xf32>
    %114 = vector.extract_strided_slice %109 {offsets = [1, 0], sizes = [1, 80], strides = [1, 1]} : vector<5x80xf32> to vector<1x80xf32>
    %c1_97 = arith.constant 1 : index
    %c0_98 = arith.constant 0 : index
    %c0_99 = arith.constant 0 : index
    %115 = vector.load %arg12[%c1_97, %c0_98, %c0_99] : memref<5x80x128xf32, #tpu.memory_space<vmem>>, vector<1x80x128xf32>
    %116 = vector.shape_cast %115 : vector<1x80x128xf32> to vector<80x128xf32>
    %cst_100 = arith.constant dense<0.000000e+00> : vector<1x128xf32>
    %117 = tpu.matmul %114, %116, %cst_100 {dimension_numbers = #tpu.dot_dimension_numbers<[1], [0], [0], [1], [0, 0, 1, 1], [], []>} : vector<1x80xf32>, vector<80x128xf32>, vector<1x128xf32> -> vector<1x128xf32>
    %118 = arith.addf %113, %117 : vector<1x128xf32>
    %119 = vector.extract_strided_slice %109 {offsets = [2, 0], sizes = [1, 80], strides = [1, 1]} : vector<5x80xf32> to vector<1x80xf32>
    %c2_101 = arith.constant 2 : index
    %c0_102 = arith.constant 0 : index
    %c0_103 = arith.constant 0 : index
    %120 = vector.load %arg12[%c2_101, %c0_102, %c0_103] : memref<5x80x128xf32, #tpu.memory_space<vmem>>, vector<1x80x128xf32>
    %121 = vector.shape_cast %120 : vector<1x80x128xf32> to vector<80x128xf32>
    %cst_104 = arith.constant dense<0.000000e+00> : vector<1x128xf32>
    %122 = tpu.matmul %119, %121, %cst_104 {dimension_numbers = #tpu.dot_dimension_numbers<[1], [0], [0], [1], [0, 0, 1, 1], [], []>} : vector<1x80xf32>, vector<80x128xf32>, vector<1x128xf32> -> vector<1x128xf32>
    %123 = arith.addf %118, %122 : vector<1x128xf32>
    %124 = vector.extract_strided_slice %109 {offsets = [3, 0], sizes = [1, 80], strides = [1, 1]} : vector<5x80xf32> to vector<1x80xf32>
    %c3_105 = arith.constant 3 : index
    %c0_106 = arith.constant 0 : index
    %c0_107 = arith.constant 0 : index
    %125 = vector.load %arg12[%c3_105, %c0_106, %c0_107] : memref<5x80x128xf32, #tpu.memory_space<vmem>>, vector<1x80x128xf32>
    %126 = vector.shape_cast %125 : vector<1x80x128xf32> to vector<80x128xf32>
    %cst_108 = arith.constant dense<0.000000e+00> : vector<1x128xf32>
    %127 = tpu.matmul %124, %126, %cst_108 {dimension_numbers = #tpu.dot_dimension_numbers<[1], [0], [0], [1], [0, 0, 1, 1], [], []>} : vector<1x80xf32>, vector<80x128xf32>, vector<1x128xf32> -> vector<1x128xf32>
    %128 = arith.addf %123, %127 : vector<1x128xf32>
    %129 = vector.extract_strided_slice %109 {offsets = [4, 0], sizes = [1, 80], strides = [1, 1]} : vector<5x80xf32> to vector<1x80xf32>
    %c4_109 = arith.constant 4 : index
    %c0_110 = arith.constant 0 : index
    %c0_111 = arith.constant 0 : index
    %130 = vector.load %arg12[%c4_109, %c0_110, %c0_111] : memref<5x80x128xf32, #tpu.memory_space<vmem>>, vector<1x80x128xf32>
    %131 = vector.shape_cast %130 : vector<1x80x128xf32> to vector<80x128xf32>
    %cst_112 = arith.constant dense<0.000000e+00> : vector<1x128xf32>
    %132 = tpu.matmul %129, %131, %cst_112 {dimension_numbers = #tpu.dot_dimension_numbers<[1], [0], [0], [1], [0, 0, 1, 1], [], []>} : vector<1x80xf32>, vector<80x128xf32>, vector<1x128xf32> -> vector<1x128xf32>
    %133 = arith.addf %128, %132 : vector<1x128xf32>
    %c0_113 = arith.constant 0 : index
    %c0_114 = arith.constant 0 : index
    %134 = vector.load %arg13[%c0_113, %c0_114] : memref<1x128xf32, #tpu.memory_space<vmem>>, vector<1x128xf32>
    %135 = arith.addf %133, %134 : vector<1x128xf32>
    %136 = math.tanh %135 : vector<1x128xf32>
    %c0_115 = arith.constant 0 : index
    %c0_116 = arith.constant 0 : index
    %137 = vector.load %arg14[%c0_115, %c0_116] : memref<128x128xf32, #tpu.memory_space<vmem>>, vector<128x128xf32>
    %cst_117 = arith.constant dense<0.000000e+00> : vector<1x128xf32>
    %138 = tpu.matmul %136, %137, %cst_117 {dimension_numbers = #tpu.dot_dimension_numbers<[1], [0], [0], [1], [0, 0, 1, 1], [], []>} : vector<1x128xf32>, vector<128x128xf32>, vector<1x128xf32> -> vector<1x128xf32>
    %c0_118 = arith.constant 0 : index
    %c0_119 = arith.constant 0 : index
    %139 = vector.load %arg15[%c0_118, %c0_119] : memref<1x128xf32, #tpu.memory_space<vmem>>, vector<1x128xf32>
    %140 = arith.addf %138, %139 : vector<1x128xf32>
    %141 = math.tanh %140 : vector<1x128xf32>
    %c0_120 = arith.constant 0 : index
    %c0_121 = arith.constant 0 : index
    %142 = vector.load %arg16[%c0_120, %c0_121] : memref<128x128xf32, #tpu.memory_space<vmem>>, vector<128x128xf32>
    %cst_122 = arith.constant dense<0.000000e+00> : vector<1x128xf32>
    %143 = tpu.matmul %141, %142, %cst_122 {dimension_numbers = #tpu.dot_dimension_numbers<[1], [0], [0], [1], [0, 0, 1, 1], [], []>} : vector<1x128xf32>, vector<128x128xf32>, vector<1x128xf32> -> vector<1x128xf32>
    %c0_123 = arith.constant 0 : index
    %c0_124 = arith.constant 0 : index
    %144 = vector.load %arg17[%c0_123, %c0_124] : memref<1x128xf32, #tpu.memory_space<vmem>>, vector<1x128xf32>
    %145 = arith.addf %143, %144 : vector<1x128xf32>
    %c0_125 = arith.constant 0 : index
    %c0_126 = arith.constant 0 : index
    %c0_127 = arith.constant 0 : index
    %146 = vector.load %arg18[%c0_125, %c0_126, %c0_127] : memref<1x1x128xf32, #tpu.memory_space<vmem>>, vector<1x1x128xf32>
    %147 = vector.shape_cast %146 : vector<1x1x128xf32> to vector<1x128xf32>
    %148 = vector.shape_cast %145 : vector<1x128xf32> to vector<1x1x128xf32>
    tpu.vector_store %arg18[%c0_125, %c0_126, %c0_127], %148 {strides = array<i32>} : memref<1x1x128xf32, #tpu.memory_space<vmem>>, vector<1x1x128xf32>,
    return
  }
  func.func @transform_0(%arg0: i32) -> (i32, i32, i32) {
    %c0_i32 = arith.constant 0 : i32
    %c0_i32_0 = arith.constant 0 : i32
    %c0_i32_1 = arith.constant 0 : i32
    return %arg0, %c0_i32, %c0_i32_0 : i32, i32, i32
  }
  func.func @transform_1(%arg0: i32) -> (i32, i32, i32) {
    %c0_i32 = arith.constant 0 : i32
    %c0_i32_0 = arith.constant 0 : i32
    %c0_i32_1 = arith.constant 0 : i32
    %c0_i32_2 = arith.constant 0 : i32
    return %c0_i32, %c0_i32_0, %c0_i32_1 : i32, i32, i32
  }
  func.func @transform_2(%arg0: i32) -> (i32, i32, i32) {
    %c0_i32 = arith.constant 0 : i32
    %c0_i32_0 = arith.constant 0 : i32
    %c0_i32_1 = arith.constant 0 : i32
    %c0_i32_2 = arith.constant 0 : i32
    return %c0_i32, %c0_i32_0, %c0_i32_1 : i32, i32, i32
  }
  func.func @transform_3(%arg0: i32) -> (i32, i32) {
    %c0_i32 = arith.constant 0 : i32
    %c0_i32_0 = arith.constant 0 : i32
    %c0_i32_1 = arith.constant 0 : i32
    return %c0_i32, %c0_i32_0 : i32, i32
  }
  func.func @transform_4(%arg0: i32) -> (i32, i32) {
    %c0_i32 = arith.constant 0 : i32
    %c0_i32_0 = arith.constant 0 : i32
    %c0_i32_1 = arith.constant 0 : i32
    return %c0_i32, %c0_i32_0 : i32, i32
  }
  func.func @transform_5(%arg0: i32) -> (i32, i32) {
    %c0_i32 = arith.constant 0 : i32
    %c0_i32_0 = arith.constant 0 : i32
    %c0_i32_1 = arith.constant 0 : i32
    return %c0_i32, %c0_i32_0 : i32, i32
  }
  func.func @transform_6(%arg0: i32) -> (i32, i32, i32) {
    %c0_i32 = arith.constant 0 : i32
    %c0_i32_0 = arith.constant 0 : i32
    %c0_i32_1 = arith.constant 0 : i32
    %c0_i32_2 = arith.constant 0 : i32
    return %c0_i32, %c0_i32_0, %c0_i32_1 : i32, i32, i32
  }
  func.func @transform_7(%arg0: i32) -> (i32, i32, i32) {
    %c0_i32 = arith.constant 0 : i32
    %c0_i32_0 = arith.constant 0 : i32
    %c0_i32_1 = arith.constant 0 : i32
    %c0_i32_2 = arith.constant 0 : i32
    return %c0_i32, %c0_i32_0, %c0_i32_1 : i32, i32, i32
  }
  func.func @transform_8(%arg0: i32) -> (i32, i32) {
    %c0_i32 = arith.constant 0 : i32
    %c0_i32_0 = arith.constant 0 : i32
    %c0_i32_1 = arith.constant 0 : i32
    return %c0_i32, %c0_i32_0 : i32, i32
  }
  func.func @transform_9(%arg0: i32) -> (i32, i32) {
    %c0_i32 = arith.constant 0 : i32
    %c0_i32_0 = arith.constant 0 : i32
    %c0_i32_1 = arith.constant 0 : i32
    return %c0_i32, %c0_i32_0 : i32, i32
  }
  func.func @transform_10(%arg0: i32) -> (i32, i32) {
    %c0_i32 = arith.constant 0 : i32
    %c0_i32_0 = arith.constant 0 : i32
    %c0_i32_1 = arith.constant 0 : i32
    return %c0_i32, %c0_i32_0 : i32, i32
  }
  func.func @transform_11(%arg0: i32) -> (i32, i32, i32) {
    %c0_i32 = arith.constant 0 : i32
    %c0_i32_0 = arith.constant 0 : i32
    %c0_i32_1 = arith.constant 0 : i32
    %c0_i32_2 = arith.constant 0 : i32
    return %c0_i32, %c0_i32_0, %c0_i32_1 : i32, i32, i32
  }
  func.func @transform_12(%arg0: i32) -> (i32, i32) {
    %c0_i32 = arith.constant 0 : i32
    %c0_i32_0 = arith.constant 0 : i32
    %c0_i32_1 = arith.constant 0 : i32
    return %c0_i32, %c0_i32_0 : i32, i32
  }
  func.func @transform_13(%arg0: i32) -> (i32, i32) {
    %c0_i32 = arith.constant 0 : i32
    %c0_i32_0 = arith.constant 0 : i32
    %c0_i32_1 = arith.constant 0 : i32
    return %c0_i32, %c0_i32_0 : i32, i32
  }
  func.func @transform_14(%arg0: i32) -> (i32, i32) {
    %c0_i32 = arith.constant 0 : i32
    %c0_i32_0 = arith.constant 0 : i32
    %c0_i32_1 = arith.constant 0 : i32
    return %c0_i32, %c0_i32_0 : i32, i32
  }
  func.func @transform_15(%arg0: i32) -> (i32, i32) {
    %c0_i32 = arith.constant 0 : i32
    %c0_i32_0 = arith.constant 0 : i32
    %c0_i32_1 = arith.constant 0 : i32
    return %c0_i32, %c0_i32_0 : i32, i32
  }
  func.func @transform_16(%arg0: i32) -> (i32, i32) {
    %c0_i32 = arith.constant 0 : i32
    %c0_i32_0 = arith.constant 0 : i32
    %c0_i32_1 = arith.constant 0 : i32
    return %c0_i32, %c0_i32_0 : i32, i32
  }
  func.func @transform_17(%arg0: i32) -> (i32, i32, i32) {
    %c0_i32 = arith.constant 0 : i32
    %c0_i32_0 = arith.constant 0 : i32
    %c0_i32_1 = arith.constant 0 : i32
    return %arg0, %c0_i32, %c0_i32_0 : i32, i32, i32
  }
}

</mosaic_0001>

<bundles_post_ra>
// kernel: adj_lenet_forward.1
= control target key start
LH: loop header
LB: loop body
LE: loop exit
PB: predicated region body
PF: predicated region fallthrough
CT: control target
= control target key end

     0   :  { %s3684_s0 = inlined_call_operand.vmem [shape: f32[2,32,96], index: 0, kind: input, shape index: {}]   ;;  %s3685_s1 = inlined_call_operand.vmem [shape: f32[5,96,84], index: 1, kind: input, shape index: {}]   ;;  %s3686_s2 = inlined_call_operand.vmem [shape: f32[5,96,84], index: 2, kind: input, shape index: {}]   ;;  %s3687_s3 = inlined_call_operand.vmem [shape: f32[14,28], index: 3, kind: input, shape index: {}]   ;;  %s3688_s4 = inlined_call_operand.vmem [shape: f32[14,28], index: 4, kind: input, shape index: {}]   ;;  %s3689_s5 = inlined_call_operand.vmem [shape: f32[1,84], index: 5, kind: input, shape index: {}]   ;;  %s3690_s6 = inlined_call_operand.vmem [shape: f32[5,84,80], index: 6, kind: input, shape index: {}]   ;;  %s3691_s7 = inlined_call_operand.vmem [shape: f32[5,84,80], index: 7, kind: input, shape index: {}]   ;;  %s3692_s8 = inlined_call_operand.vmem [shape: f32[5,10], index: 8, kind: input, shape index: {}]   ;;  %s3693_s9 = inlined_call_operand.vmem [shape: f32[5,10], index: 9, kind: input, shape index: {}]   ;;  %s3694_s10 = inlined_call_operand.vmem [shape: f32[1,80], index: 10, kind: input, shape index: {}]   ;;  %s3695_s11 = inlined_call_operand.vmem [shape: f32[5,80,128], index: 11, kind: input, shape index: {}]   ;;  %s3696_s12 = inlined_call_operand.vmem [shape: f32[1,128], index: 12, kind: input, shape index: {}]   ;;  %s3697_s13 = inlined_call_operand.vmem [shape: f32[128,128], index: 13, kind: input, shape index: {}]   ;;  %s3698_s14 = inlined_call_operand.vmem [shape: f32[1,128], index: 14, kind: input, shape index: {}]   ;;  %s3699_s15 = inlined_call_operand.vmem [shape: f32[128,128], index: 15, kind: input, shape index: {}]   ;;  %s3700_s16 = inlined_call_operand.vmem [shape: f32[1,128], index: 16, kind: input, shape index: {}]   ;;  %s3701_s17 = inlined_call_operand.hbm [shape: f32[2,1,128], index: 17, kind: output, shape index: {}]  }
   0x1   :  { %3711 = sst [smem:[#allocation12_spill]] %s3684_s0 }
   0x2   :  { %3712 = sst [smem:[#allocation13_spill]] %s3685_s1 }
   0x3   :  { %3713 = sst [smem:[#allocation14_spill]] %s3686_s2 }
   0x4   :  { %3714 = sst [smem:[#allocation15_spill]] %s3700_s16 }
   0x5   :  { %22 = vsyncpa [#allocation3], 0 }
   0x6   :  { %24 = vsyncpa [#allocation3 + $0x1], 0  ;;  %s2479_s24 = smov 0   ;;  %s2481_s25 = smov 0  }
   0x7   :  { %s2483_s26 = smov 0   ;;  %s2485_s27 = smov 0  }
   0x8 LB: > { %3715 = sst [smem:[#allocation5_spill]] %s2375_s24  ;;  %s2500_s28 = sadd.s32 4294967295, %s2387_s27   ;;  %s2387_s27 = sphi %s2485_s27, %s3732_s27   ;;  %s2383_s26 = sphi %s2483_s26, %s3734_s26   ;;  %s2379_s25 = sphi %s2481_s25, %s3736_s25   ;;  %s2375_s24 = sphi %s2479_s24, %s3735_s24  }
   0x9   : > { %3716 = sst [smem:[#allocation6_spill]] %s2383_s26  ;;  %s1956_s29 = sadd.s32 4294967294, %s2387_s27  }
   0xa   : > { %3717 = sst [smem:[#allocation7_spill]] %s2387_s27  ;;  %s2504_s0 = sadd.s32 1, %s2387_s27  }
   0xb   : > { %3718 = sst [smem:[#allocation8_spill]] %s2504_s0  ;;  %s399_s30 = sadd.s32 1, %s2383_s26 }
   0xc   : > { %s396_s18 = ssub.s32 %s2387_s27, %s2504_s0  ;;  %p409_p0 = scmp.ne.s32.totalorder %s2383_s26, %s2379_s25 }
   0xd   : > { %p397_p1 = scmp.eq.s32.totalorder %s396_s18, 0  ;;  %p410_p2 = scmp.eq.s32.totalorder %s2500_s28, 1 }
   0xe   : > { %p415_p3 = scmp.ne.s32.totalorder %s2379_s25, %s2375_s24  ;;  %p416_p4 = scmp.eq.s32.totalorder %s1956_s29, 1 }
   0xf   : > { %s2515_s19 = scalar_select %p397_p1, %s2383_s26, %s399_s30  }
  0x10   : > { %p2517_p5 = por %p410_p2, %p409_p0  ;;  %p2521_p6 = por %p416_p4, %p415_p3 }
  0x11   : > { %3719 = sst [smem:[#allocation9_spill]] %s2515_s19  ;;  %p1959_p7 = scmp.ge.s32.totalorder %s2387_s27, 1 }
  0x12   : > { %s3720_s1 = scalar_select %p2517_p5, 1, 0 }
  0x13   : > { %s3722_s20 = scalar_select %p2521_p6, 1, 0 }
  0x14   : > { %3721 = sst [smem:[#allocation10_spill]] %s3720_s1  ;;  %p490_p8 = scmp.lt.s32.totalorder %s2387_s27, 3 }
  0x15   : > { %3723 = sst [smem:[#allocation11_spill]] %s3722_s20 }
  0x16   : > { %p491_p9 = pnand %p1959_p7, %p490_p8 }
  0x17   : > { %s3724_s23 = sld [smem:[#allocation13_spill]] (!%p491_p9)  ;;  %p541_p10 = scmp.lt.s32.totalorder (!%p491_p9), %s2500_s28, 1 }
  0x18   : > { %494 = sbr.rel (%p491_p9) target bundleno = 1183 (0x49f), region = 88  ;;  %s3725_s2 = sld [smem:[#allocation14_spill]] (!%p491_p9) }
  0x19   : > { %s3726_s16 = sld [smem:[#allocation12_spill]] (!%p491_p9)  ;;  %s539_s24 = sand.u32 (!%p491_p9), 1, %s2379_s25  }
  0x1a   : > { %s1897_s22 = scalar_lea.hbm (!%p491_p9), %s3701_s17, %s2500_s28  ;;  %s1889_s18 = scalar_lea.sflag (!%p491_p9), [#allocation3], %s539_s24 }
  0x1b   : > { %s1901_s27 = sshll.u32 (!%p491_p9), %s1897_s22, 4  ;;  %s1902_s27 = int_to_ptr.hbm [resolvable:$true] %s1901_s27 }
  0x1c   : > { %s2339_s0 = sshra.s32 (!%p491_p9), %s1902_s27, 4  ;;  %s2340_s0 = int_to_ptr.hbm [resolvable:$true] %s2339_s0 }
  0x1d   : > { %v1973_v0 = vld [vmem:[%s3724_s23 + $0xb8] sm:$0xff]  ;;  %v1972_v4 = vld [vmem:[%s3724_s23 + $0xb0] sm:$0xff]  ;;  %v1971_v8 = vld [vmem:[%s3724_s23 + $0xa8] sm:$0xff]  ;;  %s2585_s26 = scalar_select %p541_p10, %s2500_s28, 1  ;;  %vm591_vm0 = vcmask 1046528   ;;  %vm599_vm1 = vcmask 785408  }
  0x1e   : > { %v561_v1 = vld [vmem:[%s3724_s23 + $0x58] sm:$0xff]  ;;  %612 = vmatpush.msra.mxu0 %v1973_v0  ;;  %v560_v5 = vld [vmem:[%s3724_s23 + $0x50] sm:$0xff]  ;;  %v559_v9 = vld [vmem:[%s3724_s23 + $0x48] sm:$0xff]  ;;  %vm758_vm2 = vcmask 1045504   ;;  %vm866_vm3 = vcmask 1044480   ;;  %vm974_vm4 = vcmask 1043456   ;;  %p2346_p0 = scmp.lt.s32.totalorder %s2340_s0, %s3701_s17 }
  0x1f   : > { %v1993_v2 = vld [vmem:[%s3725_s2 + $0xb8] sm:$0xff]  ;;  %649 = vmatpush.msra.mxu1 %v561_v1  ;;  %v1992_v6 = vld [vmem:[%s3725_s2 + $0xb0] sm:$0xff]  ;;  %v1991_v10 = vld [vmem:[%s3725_s2 + $0xa8] sm:$0xff]  ;;  %s2273_s30 = sshll.u32 %s2585_s26, 5  ;;  %vm1075_vm5 = vcmask 228352   ;;  %vm1188_vm6 = vcmask 687104  }
  0x20   : > { %v573_v3 = vld [vmem:[%s3725_s2 + $0x58] sm:$0xff]  ;;  %691 = vmatpush.msra.mxu2 %v1993_v2  ;;  %v572_v7 = vld [vmem:[%s3725_s2 + $0x50] sm:$0xff]  ;;  %613 = vmatpush.msra.mxu0 %v1972_v4  ;;  %v571_v11 = vld [vmem:[%s3725_s2 + $0x48] sm:$0xff]  ;;  %s2633_s1 = scalar_lea.vmem %s3726_s16, %s2273_s30  ;;  %vm1581_vm7 = vcmask 1041408   ;;  %vm1577_vm8 = vcmask 80896   ;;  %vm1659_vm9 = vcmask 654336  }
  0x21   : > { %720 = vmatpush.msra.mxu3 %v573_v3  ;;  %650 = vmatpush.msra.mxu1 %v560_v5  ;;  %v1970_v12 = vld [vmem:[%s3724_s23 + $0xa0] sm:$0xff]  ;;  %v1969_v16 = vld [vmem:[%s3724_s23 + $0x98] sm:$0xff]  ;;  %v1968_v20 = vld [vmem:[%s3724_s23 + $0x90] sm:$0xff]  ;;  %s3728_s16 = sld [smem:[#allocation15_spill]]  ;;  %s540_s30 = scalar_lea.vmem [#allocation2], %s539_s24 }
  0x22   : > { %692 = vmatpush.msra.mxu2 %v1992_v6  ;;  %v558_v13 = vld [vmem:[%s3724_s23 + $0x40] sm:$0xff]  ;;  %614 = vmatpush.msra.mxu0 %v1971_v8  ;;  %v557_v17 = vld [vmem:[%s3724_s23 + $0x38] sm:$0xff]  ;;  %v556_v21 = vld [vmem:[%s3724_s23 + $0x30] sm:$0xff]  ;;  %s1899_s19 = sshll.u32 %s540_s30, 4  ;;  %s1900_s19 = int_to_ptr.vmem [resolvable:$true] %s1899_s19 }
  0x23   : > { %721 = vmatpush.msra.mxu3 %v572_v7  ;;  %651 = vmatpush.msra.mxu1 %v559_v9  ;;  %v1990_v14 = vld [vmem:[%s3725_s2 + $0xa0] sm:$0xff]  ;;  %v1989_v18 = vld [vmem:[%s3725_s2 + $0x98] sm:$0xff]  ;;  %v1988_v22 = vld [vmem:[%s3725_s2 + $0x90] sm:$0xff] }
  0x24   : > { %v570_v15 = vld [vmem:[%s3725_s2 + $0x40] sm:$0xff]  ;;  %693 = vmatpush.msra.mxu2 %v1991_v10  ;;  %615 = vmatpush.msra.mxu0 %v1970_v12  ;;  %v569_v19 = vld [vmem:[%s3725_s2 + $0x38] sm:$0xff]  ;;  %v568_v23 = vld [vmem:[%s3725_s2 + $0x30] sm:$0xff] }
  0x25   : > { %722 = vmatpush.msra.mxu3 %v571_v11  ;;  %652 = vmatpush.msra.mxu1 %v558_v13  ;;  %v1967_v24 = vld [vmem:[%s3724_s23 + $0x88] sm:$0xff]  ;;  %v1966_v28 = vld [vmem:[%s3724_s23 + $0x80] sm:$0xff]  ;;  %v1965_v32 = vld [vmem:[%s3724_s23 + $0x78] sm:$0xff] }
  0x26   : > { %694 = vmatpush.msra.mxu2 %v1990_v14  ;;  %616 = vmatpush.msra.mxu0 %v1969_v16  ;;  %v555_v25 = vld [vmem:[%s3724_s23 + $0x28] sm:$0xff]  ;;  %v554_v29 = vld [vmem:[%s3724_s23 + $0x20] sm:$0xff]  ;;  %v553_v33 = vld [vmem:[%s3724_s23 + $0x18] sm:$0xff] }
  0x27   : > { %723 = vmatpush.msra.mxu3 %v570_v15  ;;  %653 = vmatpush.msra.mxu1 %v557_v17  ;;  %v1987_v26 = vld [vmem:[%s3725_s2 + $0x88] sm:$0xff]  ;;  %v1986_v30 = vld [vmem:[%s3725_s2 + $0x80] sm:$0xff]  ;;  %v1985_v34 = vld [vmem:[%s3725_s2 + $0x78] sm:$0xff] }
  0x28   : > { %695 = vmatpush.msra.mxu2 %v1989_v18  ;;  %617 = vmatpush.msra.mxu0 %v1968_v20  ;;  %v567_v27 = vld [vmem:[%s3725_s2 + $0x28] sm:$0xff]  ;;  %v566_v31 = vld [vmem:[%s3725_s2 + $0x20] sm:$0xff]  ;;  %v565_v35 = vld [vmem:[%s3725_s2 + $0x18] sm:$0xff] }
  0x29   : > { %724 = vmatpush.msra.mxu3 %v569_v19  ;;  %654 = vmatpush.msra.mxu1 %v556_v21  ;;  %v1964_v36 = vld [vmem:[%s3724_s23 + $0x70] sm:$0xff]  ;;  %v2654_v38 = vld [vmem:[%s2633_s1] sm:$0xff]  ;;  %v2657_v39 = vld [vmem:[%s2633_s1 + $0x8] sm:$0xff] }
  0x2a   : > { %696 = vmatpush.msra.mxu2 %v1988_v22  ;;  %618 = vmatpush.msra.mxu0 %v1967_v24  ;;  %v552_v37 = vld [vmem:[%s3724_s23 + $0x10] sm:$0xff]  ;;  %v1963_v42 = vld [vmem:[%s3724_s23 + $0x68] sm:$0xff]  ;;  %v592_v44 = vrot.slane %v2654_v38, 1  ;;  %v593_v45 = vrot.slane %v2657_v39, 1  ;;  %v1962_v48 = vld [vmem:[%s3724_s23 + $0x60] sm:$0xff] }
  0x2b   : > { %725 = vmatpush.msra.mxu3 %v568_v23  ;;  %655 = vmatpush.msra.mxu1 %v555_v25  ;;  %v1984_v40 = vld [vmem:[%s3725_s2 + $0x70] sm:$0xff]  ;;  %v551_v43 = vld [vmem:[%s3724_s23 + $0x8] sm:$0xff]  ;;  %v550_v49 = vld [vmem:[%s3724_s23] sm:$0xff] }
  0x2c   : > { %697 = vmatpush.msra.mxu2 %v1987_v26  ;;  %619 = vmatpush.msra.mxu0 %v1966_v28  ;;  %v564_v41 = vld [vmem:[%s3725_s2 + $0x10] sm:$0xff]  ;;  %v1983_v46 = vld [vmem:[%s3725_s2 + $0x68] sm:$0xff]  ;;  %v1982_v50 = vld [vmem:[%s3725_s2 + $0x60] sm:$0xff]  ;;  %v594_v52 = vsel %vm591_vm0, %v592_v44, %v593_v45  ;;  %v868_v44 = vrot.slane %v2657_v39, 3 }
  0x2d   : > { %726 = vmatpush.msra.mxu3 %v567_v27  ;;  %656 = vmatpush.msra.mxu1 %v554_v29  ;;  %v563_v47 = vld [vmem:[%s3725_s2 + $0x8] sm:$0xff]  ;;  %v562_v51 = vld [vmem:[%s3725_s2] sm:$0xff]  ;;  %v2693_v53 = vld [vmem:[%s2633_s1 + $0x10] sm:$0xff] }
  0x2e   : > { %698 = vmatpush.msra.mxu2 %v1986_v30  ;;  %620 = vmatpush.msra.mxu0 %v1965_v32  ;;  %v2013_v54 = vld [vmem:[%s3724_s23 + $0x118] sm:$0xff]  ;;  %v595_v58 = vrot.slane %v2693_v53, 1  ;;  %v2012_v59 = vld [vmem:[%s3724_s23 + $0x110] sm:$0xff]  ;;  %v2011_v63 = vld [vmem:[%s3724_s23 + $0x108] sm:$0xff] }
  0x2f   : > { %727 = vmatpush.msra.mxu3 %v566_v31  ;;  %657 = vmatpush.msra.mxu1 %v553_v33  ;;  %v2029_v55 = vld [vmem:[%s3725_s2 + $0x118] sm:$0xff]  ;;  %v2028_v60 = vld [vmem:[%s3725_s2 + $0x110] sm:$0xff]  ;;  %v2027_v0 = vld [vmem:[%s3725_s2 + $0x108] sm:$0xff] }
  0x30   : > { %699 = vmatpush.msra.mxu2 %v1985_v34  ;;  %621 = vmatpush.msra.mxu0 %v1964_v36  ;;  %v2045_v56 = vld [vmem:[%s3724_s23 + $0x178] sm:$0xff]  ;;  %v2044_v61 = vld [vmem:[%s3724_s23 + $0x170] sm:$0xff]  ;;  %v2043_v1 = vld [vmem:[%s3724_s23 + $0x168] sm:$0xff]  ;;  %v596_v3 = vsel %vm591_vm0, %v593_v45, %v595_v58 }
  0x31   : > { %728 = vmatpush.msra.mxu3 %v565_v35  ;;  %658 = vmatpush.msra.mxu1 %v552_v37  ;;  %v2061_v57 = vld [vmem:[%s3725_s2 + $0x178] sm:$0xff]  ;;  %v2060_v62 = vld [vmem:[%s3725_s2 + $0x170] sm:$0xff]  ;;  %v2059_v2 = vld [vmem:[%s3725_s2 + $0x168] sm:$0xff]  ;;  %v759_v37 = vrot.slane %v2654_v38, 2 }
  0x32   : > { %700 = vmatpush.msra.mxu2 %v1984_v40  ;;  %622 = vmatpush.msra.mxu0 %v1963_v42  ;;  %v2740_v4 = vld [vmem:[%s2633_s1 + $0x18] sm:$0xff]  ;;  %v2010_v5 = vld [vmem:[%s3724_s23 + $0x100] sm:$0xff]  ;;  %v2008_v14 = vld [vmem:[%s3724_s23 + $0xf0] sm:$0xff]  ;;  %v760_v40 = vrot.slane %v2657_v39, 2  ;;  %s2345_s1 = scalar_lea.hbm %s3701_s17, 2 }
  0x33   : > { %729 = vmatpush.msra.mxu3 %v564_v41  ;;  %659 = vmatpush.msra.mxu1 %v551_v43  ;;  %v2026_v6 = vld [vmem:[%s3725_s2 + $0x100] sm:$0xff]  ;;  %v597_v9 = vrot.slane %v2740_v4, 1  ;;  %v2009_v10 = vld [vmem:[%s3724_s23 + $0xf8] sm:$0xff]  ;;  %v2024_v15 = vld [vmem:[%s3725_s2 + $0xf0] sm:$0xff]  ;;  %v867_v43 = vrot.slane %v2654_v38, 3 }
  0x34   : > { %701 = vmatpush.msra.mxu2 %v1983_v46  ;;  %623 = vmatpush.msra.mxu0 %v1962_v48  ;;  %v2042_v7 = vld [vmem:[%s3724_s23 + $0x160] sm:$0xff]  ;;  %v2025_v11 = vld [vmem:[%s3725_s2 + $0xf8] sm:$0xff]  ;;  %v2040_v16 = vld [vmem:[%s3724_s23 + $0x150] sm:$0xff] }
  0x35   : > { %730 = vmatpush.msra.mxu3 %v563_v47  ;;  %660 = vmatpush.msra.mxu1 %v550_v49  ;;  %v2058_v8 = vld [vmem:[%s3725_s2 + $0x160] sm:$0xff]  ;;  %v2041_v12 = vld [vmem:[%s3724_s23 + $0x158] sm:$0xff]  ;;  %v2056_v17 = vld [vmem:[%s3725_s2 + $0x150] sm:$0xff]  ;;  %v598_v18 = vsel %vm591_vm0, %v595_v58, %v597_v9  ;;  %v761_v49 = vsel %vm758_vm2, %v759_v37, %v760_v40 }
  0x36   : > { %702 = vmatpush.msra.mxu2 %v1982_v50  ;;  %1974 = vmatmul.msk.f32.vlgmr.msra.gmra.mxu0 %vm599_vm1, %v594_v52  ;;  %v2057_v13 = vld [vmem:[%s3725_s2 + $0x158] sm:$0xff]  ;;  %v2007_v19 = vld [vmem:[%s3724_s23 + $0xe8] sm:$0xff]  ;;  %v2006_v23 = vld [vmem:[%s3724_s23 + $0xe0] sm:$0xff]  ;;  %v869_v50 = vsel %vm866_vm3, %v867_v43, %v868_v44 }
  0x37   : > { %731 = vmatpush.msra.mxu3 %v562_v51  ;;  %1978 = vmatmul.msk.f32.vlgmr.msra.gmra.mxu1 %vm599_vm1, %v2654_v38  ;;  %v2023_v20 = vld [vmem:[%s3725_s2 + $0xe8] sm:$0xff]  ;;  %v2022_v24 = vld [vmem:[%s3725_s2 + $0xe0] sm:$0xff]  ;;  %v2005_v27 = vld [vmem:[%s3724_s23 + $0xd8] sm:$0xff]  ;;  %v975_v51 = vrot.slane %v2654_v38, 4 }
  0x38   : > { %1994 = vmatmul.msk.f32.vlgmr.msra.gmra.mxu2 %vm599_vm1, %v594_v52  ;;  %1998 = vmatmul.msk.f32.vlgmr.msra.gmra.mxu3 %vm599_vm1, %v2654_v38  ;;  %v2039_v21 = vld [vmem:[%s3724_s23 + $0x148] sm:$0xff]  ;;  %v2038_v25 = vld [vmem:[%s3724_s23 + $0x140] sm:$0xff]  ;;  %v2021_v28 = vld [vmem:[%s3725_s2 + $0xd8] sm:$0xff]  ;;  %v976_v52 = vrot.slane %v2657_v39, 4  ;;  %v978_v38 = vrot.slane %v2693_v53, 4 }
  0x39   : > { %778 = vmatpush.msrb.mxu0 %v2013_v54  ;;  %824 = vmatpush.msrb.mxu1 %v2029_v55  ;;  %v2055_v22 = vld [vmem:[%s3725_s2 + $0x148] sm:$0xff]  ;;  %v2054_v26 = vld [vmem:[%s3725_s2 + $0x140] sm:$0xff]  ;;  %v2037_v29 = vld [vmem:[%s3724_s23 + $0x138] sm:$0xff] }
  0x3a   : > { %886 = vmatpush.msrb.mxu2 %v2045_v56  ;;  %932 = vmatpush.msrb.mxu3 %v2061_v57  ;;  %v2053_v30 = vld [vmem:[%s3725_s2 + $0x138] sm:$0xff]  ;;  %v2004_v31 = vld [vmem:[%s3724_s23 + $0xd0] sm:$0xff]  ;;  %v2003_v35 = vld [vmem:[%s3724_s23 + $0xc8] sm:$0xff]  ;;  %v2887_v56 = vsel %vm974_vm4, %v975_v51, %v976_v52 }
  0x3b   : > { %779 = vmatpush.msrb.mxu0 %v2012_v59  ;;  %825 = vmatpush.msrb.mxu1 %v2028_v60  ;;  %v2020_v32 = vld [vmem:[%s3725_s2 + $0xd0] sm:$0xff]  ;;  %v2019_v36 = vld [vmem:[%s3725_s2 + $0xc8] sm:$0xff]  ;;  %v2002_v45 = vld [vmem:[%s3724_s23 + $0xc0] sm:$0xff]  ;;  %v870_v59 = vrot.slane %v2693_v53, 3  ;;  %v2901_v60 = vsel %vm974_vm4, %v976_v52, %v978_v38 }
  0x3c   : > { %887 = vmatpush.msrb.mxu2 %v2044_v61  ;;  %933 = vmatpush.msrb.mxu3 %v2060_v62  ;;  %v2036_v33 = vld [vmem:[%s3724_s23 + $0x130] sm:$0xff]  ;;  %v2035_v41 = vld [vmem:[%s3724_s23 + $0x128] sm:$0xff]  ;;  %v2018_v46 = vld [vmem:[%s3725_s2 + $0xc0] sm:$0xff] }
  0x3d   : > { %780 = vmatpush.msrb.mxu0 %v2011_v63  ;;  %826 = vmatpush.msrb.mxu1 %v2027_v0  ;;  %v2052_v34 = vld [vmem:[%s3725_s2 + $0x130] sm:$0xff]  ;;  %v2051_v42 = vld [vmem:[%s3725_s2 + $0x128] sm:$0xff]  ;;  %v2034_v47 = vld [vmem:[%s3724_s23 + $0x120] sm:$0xff]  ;;  %v871_v0 = vsel %vm866_vm3, %v868_v44, %v870_v59 }
  0x3e   : > { %888 = vmatpush.msrb.mxu2 %v2043_v1  ;;  %934 = vmatpush.msrb.mxu3 %v2059_v2  ;;  %v2050_v48 = vld [vmem:[%s3725_s2 + $0x120] sm:$0xff]  ;;  %v2077_v54 = vld [vmem:[%s3724_s23 + $0x1d8] sm:$0xff]  ;;  %v2076_v57 = vld [vmem:[%s3724_s23 + $0x1d0] sm:$0xff]  ;;  %v980_v2 = vrot.slane %v2740_v4, 4 }
  0x3f   : > { %1975 = vmatmul.msk.f32.gmra.mxu0 %vm599_vm1, %v596_v3  ;;  %1979 = vmatmul.msk.f32.gmra.mxu1 %vm599_vm1, %v2657_v39  ;;  %v2093_v55 = vld [vmem:[%s3725_s2 + $0x1d8] sm:$0xff]  ;;  %v2092_v58 = vld [vmem:[%s3725_s2 + $0x1d0] sm:$0xff]  ;;  %v2075_v61 = vld [vmem:[%s3724_s23 + $0x1c8] sm:$0xff] }
  0x40   : > { %1995 = vmatmul.msk.f32.gmra.mxu2 %vm599_vm1, %v596_v3  ;;  %1999 = vmatmul.msk.f32.gmra.mxu3 %vm599_vm1, %v2657_v39  ;;  %v762_v39 = vrot.slane %v2693_v53, 2  ;;  %v2091_v62 = vld [vmem:[%s3725_s2 + $0x1c8] sm:$0xff]  ;;  %v2090_v1 = vld [vmem:[%s3725_s2 + $0x1c0] sm:$0xff]  ;;  %v764_v3 = vrot.slane %v2740_v4, 2 }
  0x41   : > { %781 = vmatpush.msrb.mxu0 %v2010_v5  ;;  %827 = vmatpush.msrb.mxu1 %v2026_v6  ;;  %v2073_v5 = vld [vmem:[%s3724_s23 + $0x1b8] sm:$0xff] }
  0x42   : > { %889 = vmatpush.msrb.mxu2 %v2042_v7  ;;  %935 = vmatpush.msrb.mxu3 %v2058_v8  ;;  %v763_v63 = vsel %vm758_vm2, %v760_v40, %v762_v39  ;;  %v2089_v6 = vld [vmem:[%s3725_s2 + $0x1b8] sm:$0xff]  ;;  %v872_v7 = vrot.slane %v2740_v4, 3  ;;  %v981_v8 = vsel %vm974_vm4, %v978_v38, %v980_v2 }
  0x43   : > { %782 = vmatpush.msrb.mxu0 %v2009_v10  ;;  %828 = vmatpush.msrb.mxu1 %v2025_v11  ;;  %v2088_v10 = vld [vmem:[%s3725_s2 + $0x1b0] sm:$0xff]  ;;  %v765_v11 = vsel %vm758_vm2, %v762_v39, %v764_v3 }
  0x44   : > { %890 = vmatpush.msrb.mxu2 %v2041_v12  ;;  %936 = vmatpush.msrb.mxu3 %v2057_v13  ;;  %v873_v12 = vsel %vm866_vm3, %v870_v59, %v872_v7  ;;  %v2087_v13 = vld [vmem:[%s3725_s2 + $0x1a8] sm:$0xff] }
  0x45   : > { %783 = vmatpush.msrb.mxu0 %v2008_v14  ;;  %829 = vmatpush.msrb.mxu1 %v2024_v15  ;;  %v2070_v14 = vld [vmem:[%s3724_s23 + $0x1a0] sm:$0xff] }
  0x46   : > { %891 = vmatpush.msrb.mxu2 %v2040_v16  ;;  %937 = vmatpush.msrb.mxu3 %v2056_v17  ;;  %v2086_v15 = vld [vmem:[%s3725_s2 + $0x1a0] sm:$0xff]  ;;  %v2069_v16 = vld [vmem:[%s3724_s23 + $0x198] sm:$0xff] }
  0x47   : > { %1976 = vmatmul.msk.f32.gmra.mxu0 %vm599_vm1, %v598_v18  ;;  %1980 = vmatmul.msk.f32.gmra.mxu1 %vm599_vm1, %v2693_v53  ;;  %v2085_v17 = vld [vmem:[%s3725_s2 + $0x198] sm:$0xff] }
  0x48   : > { %1996 = vmatmul.msk.f32.gmra.mxu2 %vm599_vm1, %v598_v18  ;;  %2000 = vmatmul.msk.f32.gmra.mxu3 %vm599_vm1, %v2693_v53  ;;  %v2074_v53 = vld [vmem:[%s3724_s23 + $0x1c0] sm:$0xff]  ;;  %v2068_v18 = vld [vmem:[%s3724_s23 + $0x190] sm:$0xff] }
  0x49   : > { %784 = vmatpush.msrb.mxu0 %v2007_v19  ;;  %830 = vmatpush.msrb.mxu1 %v2023_v20  ;;  %v2084_v19 = vld [vmem:[%s3725_s2 + $0x190] sm:$0xff]  ;;  %v2067_v20 = vld [vmem:[%s3724_s23 + $0x188] sm:$0xff] }
  0x4a   : > { %892 = vmatpush.msrb.mxu2 %v2039_v21  ;;  %938 = vmatpush.msrb.mxu3 %v2055_v22  ;;  %v2083_v21 = vld [vmem:[%s3725_s2 + $0x188] sm:$0xff]  ;;  %v2066_v22 = vld [vmem:[%s3724_s23 + $0x180] sm:$0xff] }
  0x4b   : > { %785 = vmatpush.msrb.mxu0 %v2006_v23  ;;  %831 = vmatpush.msrb.mxu1 %v2022_v24  ;;  %v2082_v23 = vld [vmem:[%s3725_s2 + $0x180] sm:$0xff]  ;;  %s2341_s2 = scalar_lea.hbm %s2340_s0, 1 }
  0x4c   : > { %893 = vmatpush.msrb.mxu2 %v2038_v25  ;;  %939 = vmatpush.msrb.mxu3 %v2054_v26  ;;  %p2342_p11 = scmp.ne.s32.totalorder %s2340_s0, %s2341_s2  ;;  %p2347_p1 = scmp.lt.s32.totalorder %s2345_s1, %s2341_s2 }
  0x4d   : > { %786 = vmatpush.msrb.mxu0 %v2005_v27  ;;  %832 = vmatpush.msrb.mxu1 %v2021_v28 }
  0x4e   : > { %894 = vmatpush.msrb.mxu2 %v2037_v29  ;;  %940 = vmatpush.msrb.mxu3 %v2053_v30  ;;  %p2343_p12 = pnand %p2342_p11, %p2517_p5  ;;  %p2348_p2 = por %p2347_p1, %p2346_p0 }
  0x4f   : > { %1977 = vmatmul.msk.f32.gmra.mxu0 %vm599_vm1, %v597_v9  ;;  %1981 = vmatmul.msk.f32.gmra.mxu1 %vm599_vm1, %v2740_v4 }
  0x50   : > { %1997 = vmatmul.msk.f32.gmra.mxu2 %vm599_vm1, %v597_v9  ;;  %2001 = vmatmul.msk.f32.gmra.mxu3 %vm599_vm1, %v2740_v4  ;;  %v2072_v9 = vld [vmem:[%s3724_s23 + $0x1b0] sm:$0xff]  ;;  %v2071_v4 = vld [vmem:[%s3724_s23 + $0x1a8] sm:$0xff]  ;;  %p2344_p13 = pneg %p2343_p12 }
  0x51   : > { %787 = vmatpush.msrb.mxu0 %v2004_v31  ;;  %833 = vmatpush.msrb.mxu1 %v2020_v32 }
  0x52   : > { %895 = vmatpush.msrb.mxu2 %v2036_v33  ;;  %941 = vmatpush.msrb.mxu3 %v2052_v34  ;;  %p2349_p3 = pnand %p2348_p2, %p2344_p13 }
  0x53   : > { %788 = vmatpush.msrb.mxu0 %v2003_v35  ;;  %834 = vmatpush.msrb.mxu1 %v2019_v36 }
  0x54   : > { %896 = vmatpush.msrb.mxu2 %v2035_v41  ;;  %942 = vmatpush.msrb.mxu3 %v2051_v42 }
  0x55   : > { %789 = vmatpush.msrb.mxu0 %v2002_v45  ;;  %835 = vmatpush.msrb.mxu1 %v2018_v46 }
  0x56   : > { %897 = vmatpush.msrb.mxu2 %v2034_v47  ;;  %943 = vmatpush.msrb.mxu3 %v2050_v48 }
  0x57   : > { %2014 = vmatmul.msk.f32.vlgmr.msrb.gmra.mxu0 %vm599_vm1, %v761_v49  ;;  %2030 = vmatmul.msk.f32.vlgmr.msrb.gmra.mxu1 %vm599_vm1, %v761_v49 }
  0x58   : > { %2046 = vmatmul.msk.f32.vlgmr.msrb.gmra.mxu2 %vm599_vm1, %v869_v50  ;;  %2062 = vmatmul.msk.f32.vlgmr.msrb.gmra.mxu3 %vm599_vm1, %v869_v50 }
  0x59   : > { %994 = vmatpush.msra.mxu0 %v2077_v54  ;;  %1040 = vmatpush.msra.mxu1 %v2093_v55 }
  0x5b   : > { %995 = vmatpush.msra.mxu0 %v2076_v57  ;;  %1041 = vmatpush.msra.mxu1 %v2092_v58 }
  0x5d   : > { %996 = vmatpush.msra.mxu0 %v2075_v61  ;;  %1042 = vmatpush.msra.mxu1 %v2091_v62  ;;  %v1170_v62 = vld [vmem:[%s3691_s7 + $0x50] sm:$0xf] }
  0x5f   : > { %2015 = vmatmul.msk.f32.gmra.mxu0 %vm599_vm1, %v763_v63  ;;  %2031 = vmatmul.msk.f32.gmra.mxu1 %vm599_vm1, %v763_v63  ;;  %v1169_v63 = vld [vmem:[%s3691_s7 + $0x48] sm:$0xff] }
  0x60   : > { %2047 = vmatmul.msk.f32.gmra.mxu2 %vm599_vm1, %v871_v0  ;;  %2063 = vmatmul.msk.f32.gmra.mxu3 %vm599_vm1, %v871_v0  ;;  %v1168_v0 = vld [vmem:[%s3691_s7 + $0x40] sm:$0xff] }
  0x61   : > { %997 = vmatpush.msra.mxu0 %v2074_v53  ;;  %1043 = vmatpush.msra.mxu1 %v2090_v1 }
  0x63   : > { %998 = vmatpush.msra.mxu0 %v2073_v5  ;;  %1044 = vmatpush.msra.mxu1 %v2089_v6  ;;  %v1167_v5 = vld [vmem:[%s3691_s7 + $0x38] sm:$0xff] }
  0x65   : > { %999 = vmatpush.msra.mxu0 %v2072_v9  ;;  %1045 = vmatpush.msra.mxu1 %v2088_v10 }
  0x67   : > { %2016 = vmatmul.msk.f32.gmra.mxu0 %vm599_vm1, %v765_v11  ;;  %2032 = vmatmul.msk.f32.gmra.mxu1 %vm599_vm1, %v765_v11 }
  0x68   : > { %2048 = vmatmul.msk.f32.gmra.mxu2 %vm599_vm1, %v873_v12  ;;  %2064 = vmatmul.msk.f32.gmra.mxu3 %vm599_vm1, %v873_v12 }
  0x69   : > { %1000 = vmatpush.msra.mxu0 %v2071_v4  ;;  %1046 = vmatpush.msra.mxu1 %v2087_v13 }
  0x6b   : > { %1001 = vmatpush.msra.mxu0 %v2070_v14  ;;  %1047 = vmatpush.msra.mxu1 %v2086_v15  ;;  %v1165_v15 = vld [vmem:[%s3691_s7 + $0x28] sm:$0xff] }
  0x6d   : > { %1002 = vmatpush.msra.mxu0 %v2069_v16  ;;  %1048 = vmatpush.msra.mxu1 %v2085_v17  ;;  %v2131_v16 = vld [vmem:[%s3691_s7 + $0xa8] sm:$0xf] }
  0x6f   : > { %2017 = vmatmul.msk.f32.gmra.mxu0 %vm599_vm1, %v764_v3  ;;  %2033 = vmatmul.msk.f32.gmra.mxu1 %vm599_vm1, %v764_v3 }
  0x70   : > { %2049 = vmatmul.msk.f32.gmra.mxu2 %vm599_vm1, %v872_v7  ;;  %2065 = vmatmul.msk.f32.gmra.mxu3 %vm599_vm1, %v872_v7 }
  0x71   : > { %1003 = vmatpush.msra.mxu0 %v2068_v18  ;;  %1049 = vmatpush.msra.mxu1 %v2084_v19 }
  0x73   : > { %1004 = vmatpush.msra.mxu0 %v2067_v20  ;;  %1050 = vmatpush.msra.mxu1 %v2083_v21 }
  0x75   : > { %1005 = vmatpush.msra.mxu0 %v2066_v22  ;;  %1051 = vmatpush.msra.mxu1 %v2082_v23 }
  0x77   : > { %2078 = vmatmul.msk.f32.vlgmr.msra.gmra.mxu0 %vm599_vm1, %v2887_v56  ;;  %2094 = vmatmul.msk.f32.vlgmr.msra.gmra.mxu1 %vm599_vm1, %v2887_v56 }
  0x78   : > { %2135 = vmatpush.msk.msrb.mxu1 %vm974_vm4, %v1170_v62  ;;  %2132 = vmatpush.msk.msrb.mxu0 %vm974_vm4, %v2131_v16  ;;  %v1151_v62 = vld [vmem:[%s3690_s6 + $0x10] sm:$0xff]  ;;  %v2106_v16 = vld [vmem:[%s3690_s6 + $0x68] sm:$0xff] }
  0x7a   : > { %1296 = vmatpush.msrb.mxu1 %v1169_v63  ;;  %v1150_v63 = vld [vmem:[%s3690_s6 + $0x8] sm:$0xff] }
  0x7c   : > { %1297 = vmatpush.msrb.mxu1 %v1168_v0  ;;  %v2110_v0 = vld [vmem:[%s3690_s6 + $0x88] sm:$0xff] }
  0x7e   : > { %1298 = vmatpush.msrb.mxu1 %v1167_v5  ;;  %v1162_v5 = vld [vmem:[%s3691_s7 + $0x10] sm:$0xff] }
  0x7f   : > { %2079 = vmatmul.msk.f32.gmra.mxu0 %vm599_vm1, %v2901_v60  ;;  %2095 = vmatmul.msk.f32.gmra.mxu1 %vm599_vm1, %v2901_v60 }
  0x87   : > { %2080 = vmatmul.msk.f32.gmra.mxu0 %vm599_vm1, %v981_v8  ;;  %2096 = vmatmul.msk.f32.gmra.mxu1 %vm599_vm1, %v981_v8  ;;  %v1166_v8 = vld [vmem:[%s3691_s7 + $0x30] sm:$0xff] }
  0x88   : > { %1299 = vmatpush.msrb.mxu1 %v1166_v8  ;;  %v2108_v8 = vld [vmem:[%s3690_s6 + $0x78] sm:$0xff] }
  0x8a   : > { %1300 = vmatpush.msrb.mxu1 %v1165_v15  ;;  %v2190_v15 = vld [vmem:[%s3691_s7 + $0x158] sm:$0xf] }
  0x8f   : > { %2081 = vmatmul.msk.f32.gmra.mxu0 %vm599_vm1, %v980_v2  ;;  %2097 = vmatmul.msk.f32.gmra.mxu1 %vm599_vm1, %v980_v2 }
  0xb3   : > { %v625_v24 = vpop.f32.mrf.mxu0 }
  0xb4   : > { %v662_v25 = vpop.f32.mrf.mxu1 }
  0xb5   : > { %v663_v26 = vadd.f32 %v662_v25, %v625_v24  ;;  %v1164_v24 = vld [vmem:[%s3691_s7 + $0x20] sm:$0xff] }
  0xb6   : > { %v2130_v25 = vld [vmem:[%s3691_s7 + $0xa0] sm:$0xff]  ;;  %1301 = vmatpush.msrb.mxu1 %v1164_v24  ;;  %v2104_v24 = vld [vmem:[%s3690_s6 + $0x58] sm:$0xff] }
  0xb7   : > { %1270 = vmatpush.msrb.mxu0 %v2130_v25  ;;  %v2157_v25 = vld [vmem:[%s3691_s7 + $0xd8] sm:$0xff] }
  0xbb   : > { %v704_v30 = vpop.f32.mrf.mxu2  ;;  %v733_v31 = vpop.f32.mrf.mxu3 }
  0xbc   : > { %v628_v27 = vpop.f32.mrf.mxu0  ;;  %v665_v28 = vpop.f32.mrf.mxu1  ;;  %v734_v9 = vadd.f32 %v733_v31, %v704_v30 }
  0xbd   : > { %v666_v29 = vadd.f32 %v665_v28, %v628_v27 }
  0xc3   : > { %v707_v35 = vpop.f32.mrf.mxu2  ;;  %v736_v36 = vpop.f32.mrf.mxu3 }
  0xc4   : > { %v631_v32 = vpop.f32.mrf.mxu0  ;;  %v668_v33 = vpop.f32.mrf.mxu1  ;;  %v737_v6 = vadd.f32 %v736_v36, %v707_v35 }
  0xc5   : > { %v669_v34 = vadd.f32 %v668_v33, %v631_v32 }
  0xcb   : > { %v710_v43 = vpop.f32.mrf.mxu2  ;;  %v739_v44 = vpop.f32.mrf.mxu3 }
  0xcc   : > { %v634_v37 = vpop.f32.mrf.mxu0  ;;  %v671_v40 = vpop.f32.mrf.mxu1  ;;  %v740_v2 = vadd.f32 %v739_v44, %v710_v43 }
  0xcd   : > { %v672_v7 = vadd.f32 %v671_v40, %v634_v37 }
  0xd3   : > { %v713_v47 = vpop.f32.mrf.mxu2  ;;  %v742_v48 = vpop.f32.mrf.mxu3 }
  0xd4   : > { %v791_v41 = vpop.f32.mrf.mxu0  ;;  %v837_v42 = vpop.f32.mrf.mxu1  ;;  %v743_v3 = vadd.f32 %v742_v48, %v713_v47  ;;  %v1073_v47 = vld [vmem:[%s3687_s3] sm:$0xff] }
  0xd5   : > { %v803_v17 = vadd.f32 %v791_v41, %v663_v26  ;;  %v849_v27 = vadd.f32 %v837_v42, %v734_v9  ;;  %v1108_v48 = vld [vmem:[%s3688_s4] sm:$0xff]  ;;  %v1161_v9 = vld [vmem:[%s3691_s7 + $0x8] sm:$0xff] }
  0xdb   : > { %v899_v51 = vpop.f32.mrf.mxu2  ;;  %v945_v52 = vpop.f32.mrf.mxu3 }
  0xdc   : > { %v794_v45 = vpop.f32.mrf.mxu0  ;;  %v840_v46 = vpop.f32.mrf.mxu1  ;;  %v911_v35 = vadd.f32 %v899_v51, %v803_v17  ;;  %v957_v36 = vadd.f32 %v945_v52, %v849_v27  ;;  %v1158_v51 = vld [vmem:[%s3690_s6 + $0x48] sm:$0xff]  ;;  %v2113_v52 = vld [vmem:[%s3690_s6 + $0xa0] sm:$0xff] }
  0xdd   : > { %v804_v18 = vadd.f32 %v794_v45, %v666_v29  ;;  %v850_v19 = vadd.f32 %v840_v46, %v737_v6  ;;  %v2162_v6 = vld [vmem:[%s3691_s7 + $0x100] sm:$0xf]  ;;  %v2159_v17 = vld [vmem:[%s3691_s7 + $0xe8] sm:$0xff] }
  0xde   : > { %v2123_v27 = vld [vmem:[%s3691_s7 + $0x68] sm:$0xff] }
  0xe3   : > { %v902_v56 = vpop.f32.mrf.mxu2  ;;  %v948_v38 = vpop.f32.mrf.mxu3 }
  0xe4   : > { %v797_v49 = vpop.f32.mrf.mxu0  ;;  %v843_v50 = vpop.f32.mrf.mxu1  ;;  %v912_v28 = vadd.f32 %v902_v56, %v804_v18  ;;  %v958_v26 = vadd.f32 %v948_v38, %v850_v19  ;;  %v1156_v56 = vld [vmem:[%s3690_s6 + $0x38] sm:$0xff]  ;;  %v2111_v38 = vld [vmem:[%s3690_s6 + $0x90] sm:$0xff] }
  0xe5   : > { %v805_v12 = vadd.f32 %v797_v49, %v669_v34  ;;  %v851_v4 = vadd.f32 %v843_v50, %v740_v2  ;;  %v1159_v49 = vld [vmem:[%s3690_s6 + $0x50] sm:$0xf]  ;;  %v2114_v50 = vld [vmem:[%s3690_s6 + $0xa8] sm:$0xf]  ;;  %v2129_v2 = vld [vmem:[%s3691_s7 + $0x98] sm:$0xff] }
  0xe6   : > { %1271 = vmatpush.msrb.mxu0 %v2129_v2  ;;  %v2125_v18 = vld [vmem:[%s3691_s7 + $0x78] sm:$0xff]  ;;  %v2189_v19 = vld [vmem:[%s3691_s7 + $0x150] sm:$0xff] }
  0xeb   : > { %v905_v60 = vpop.f32.mrf.mxu2  ;;  %v951_v61 = vpop.f32.mrf.mxu3 }
  0xec   : > { %v800_v54 = vpop.f32.mrf.mxu0  ;;  %v846_v55 = vpop.f32.mrf.mxu1  ;;  %v913_v20 = vadd.f32 %v905_v60, %v805_v12  ;;  %v959_v21 = vadd.f32 %v951_v61, %v851_v4  ;;  %v1153_v60 = vld [vmem:[%s3690_s6 + $0x20] sm:$0xff]  ;;  %v1152_v61 = vld [vmem:[%s3690_s6 + $0x18] sm:$0xff]  ;;  %v2107_v12 = vld [vmem:[%s3690_s6 + $0x70] sm:$0xff] }
  0xed   : > { %v806_v13 = vadd.f32 %v800_v54, %v672_v7  ;;  %v852_v14 = vadd.f32 %v846_v55, %v743_v3  ;;  %v1157_v54 = vld [vmem:[%s3690_s6 + $0x40] sm:$0xff]  ;;  %v2112_v55 = vld [vmem:[%s3690_s6 + $0x98] sm:$0xff]  ;;  %v2128_v7 = vld [vmem:[%s3691_s7 + $0x90] sm:$0xff] }
  0xee   : > { %v2109_v3 = vld [vmem:[%s3690_s6 + $0x80] sm:$0xff]  ;;  %1272 = vmatpush.msrb.mxu0 %v2128_v7 }
  0xef   : > { %v1160_v4 = vld [vmem:[%s3691_s7] sm:$0xff] }
  0xf3   : > { %v908_v10 = vpop.f32.mrf.mxu2  ;;  %v954_v11 = vpop.f32.mrf.mxu3 }
  0xf4   : > { %v1007_v39 = vpop.f32.mrf.mxu0  ;;  %v1053_v57 = vpop.f32.mrf.mxu1  ;;  %v914_v22 = vadd.f32 %v908_v10, %v806_v13  ;;  %v960_v23 = vadd.f32 %v954_v11, %v852_v14  ;;  %v2161_v10 = vld [vmem:[%s3691_s7 + $0xf8] sm:$0xff]  ;;  %v2127_v11 = vld [vmem:[%s3691_s7 + $0x88] sm:$0xff]  ;;  %v2160_v13 = vld [vmem:[%s3691_s7 + $0xf0] sm:$0xff] }
  0xf5   : > { %v1019_v43 = vadd.f32 %v1007_v39, %v911_v35  ;;  %v1065_v44 = vadd.f32 %v1053_v57, %v957_v36  ;;  %v1074_v39 = vld [vmem:[%s3687_s3 + $0x8] sm:$0x3f]  ;;  %1273 = vmatpush.msrb.mxu0 %v2127_v11  ;;  %v2126_v14 = vld [vmem:[%s3691_s7 + $0x80] sm:$0xff]  ;;  %v2146_v35 = vld [vmem:[%s3690_s6 + $0xf0] sm:$0xff] }
  0xf6   : > { %v1109_v57 = vld [vmem:[%s3688_s4 + $0x8] sm:$0x3f]  ;;  %v2185_v36 = vld [vmem:[%s3691_s7 + $0x130] sm:$0xff] }
  0xf7   : > { %v1069_v46 = vmax.f32 %v1019_v43, %v1065_v44  ;;  %1274 = vmatpush.msrb.mxu0 %v2126_v14  ;;  %v2184_v43 = vld [vmem:[%s3691_s7 + $0x128] sm:$0xff]  ;;  %v2153_v44 = vld [vmem:[%s3691_s7 + $0xb8] sm:$0xff]  ;;  %v2214_v14 = vld [vmem:[%s3691_s7 + $0x190] sm:$0xff] }
  0xf9   : > { %1275 = vmatpush.msrb.mxu0 %v2125_v18  ;;  %v2213_v18 = vld [vmem:[%s3691_s7 + $0x188] sm:$0xff] }
  0xfc   : > { %v1010_v58 = vpop.f32.mrf.mxu0  ;;  %v1056_v59 = vpop.f32.mrf.mxu1 }
  0xfd   : > { %v1020_v37 = vadd.f32 %v1010_v58, %v912_v28  ;;  %v1066_v40 = vadd.f32 %v1056_v59, %v958_v26  ;;  %v1155_v58 = vld [vmem:[%s3690_s6 + $0x30] sm:$0xff]  ;;  %v1154_v59 = vld [vmem:[%s3690_s6 + $0x28] sm:$0xff]  ;;  %v2148_v28 = vld [vmem:[%s3690_s6 + $0x100] sm:$0xf] }
  0xfe   : > { %v2187_v26 = vld [vmem:[%s3691_s7 + $0x140] sm:$0xff] }
  0xff   : > { %v1070_v42 = vmax.f32 %v1020_v37, %v1066_v40  ;;  %v2154_v37 = vld [vmem:[%s3691_s7 + $0xc0] sm:$0xff]  ;;  %v2176_v40 = vld [vmem:[%s3690_s6 + $0x158] sm:$0xf] }
 0x104   : > { %v1013_v53 = vpop.f32.mrf.mxu0  ;;  %v1059_v1 = vpop.f32.mrf.mxu1 }
 0x105   : > { %v1021_v31 = vadd.f32 %v1013_v53, %v913_v20  ;;  %v1067_v32 = vadd.f32 %v1059_v1, %v959_v21  ;;  %v1163_v53 = vld [vmem:[%s3691_s7 + $0x18] sm:$0xff]  ;;  %v1149_v1 = vld [vmem:[%s3690_s6] sm:$0xff] }
 0x106   : > { %1302 = vmatpush.msrb.mxu1 %v1163_v53  ;;  %v2105_v20 = vld [vmem:[%s3690_s6 + $0x60] sm:$0xff] }
 0x107   : > { %v1071_v45 = vmax.f32 %v1021_v31, %v1067_v32  ;;  %v2158_v21 = vld [vmem:[%s3691_s7 + $0xe0] sm:$0xff]  ;;  %v2147_v31 = vld [vmem:[%s3690_s6 + $0xf8] sm:$0xff] }
 0x108   : > { %1303 = vmatpush.msrb.mxu1 %v1162_v5  ;;  %v2186_v32 = vld [vmem:[%s3691_s7 + $0x138] sm:$0xff]  ;;  %v2166_v5 = vld [vmem:[%s3690_s6 + $0x108] sm:$0xff] }
 0x10a   : > { %1304 = vmatpush.msrb.mxu1 %v1161_v9  ;;  %v2218_v9 = vld [vmem:[%s3691_s7 + $0x1b0] sm:$0xf] }
 0x10c   : > { %v1016_v29 = vpop.f32.mrf.mxu0  ;;  %v1062_v30 = vpop.f32.mrf.mxu1  ;;  %1305 = vmatpush.msrb.mxu1 %v1160_v4  ;;  %v2216_v4 = vld [vmem:[%s3691_s7 + $0x1a0] sm:$0xff] }
 0x10d   : > { %v1022_v33 = vadd.f32 %v1016_v29, %v914_v22  ;;  %v1068_v34 = vadd.f32 %v1062_v30, %v960_v23  ;;  %v2124_v22 = vld [vmem:[%s3691_s7 + $0x70] sm:$0xff]  ;;  %v2188_v23 = vld [vmem:[%s3691_s7 + $0x148] sm:$0xff]  ;;  %v2122_v30 = vld [vmem:[%s3691_s7 + $0x60] sm:$0xff] }
 0x10e   : > { %2191 = vmatpush.msk.msra.mxu1 %vm974_vm4, %v2190_v15  ;;  %1276 = vmatpush.msrb.mxu0 %v2124_v22  ;;  %v2156_v29 = vld [vmem:[%s3691_s7 + $0xd0] sm:$0xff] }
 0x10f   : > { %v1072_v41 = vmax.f32 %v1022_v33, %v1068_v34  ;;  %v2155_v33 = vld [vmem:[%s3691_s7 + $0xc8] sm:$0xff]  ;;  %v2121_v34 = vld [vmem:[%s3691_s7 + $0x58] sm:$0xff] }
 0x110   : > { %1468 = vmatpush.msra.mxu1 %v2189_v19  ;;  %1277 = vmatpush.msrb.mxu0 %v2123_v27  ;;  %v2204_v19 = vld [vmem:[%s3690_s6 + $0x1b0] sm:$0xf] }
 0x111   : > { %2098 = vmatpush.msk.msra.mxu2 %vm974_vm4, %v1072_v41  ;;  %2101 = vmatpush.msk.msra.mxu3 %vm974_vm4, %v1072_v41  ;;  %v2145_v41 = vld [vmem:[%s3690_s6 + $0xe8] sm:$0xff] }
 0x112   : > { %1469 = vmatpush.msra.mxu1 %v2188_v23  ;;  %1278 = vmatpush.msrb.mxu0 %v2122_v30  ;;  %v2212_v23 = vld [vmem:[%s3691_s7 + $0x180] sm:$0xff] }
 0x113   : > { %1098 = vmatpush.msra.mxu2 %v1071_v45  ;;  %1129 = vmatpush.msra.mxu3 %v1071_v45  ;;  %v2175_v45 = vld [vmem:[%s3690_s6 + $0x150] sm:$0xff] }
 0x114   : > { %1470 = vmatpush.msra.mxu1 %v2187_v26  ;;  %1279 = vmatpush.msrb.mxu0 %v2121_v34  ;;  %v2202_v26 = vld [vmem:[%s3690_s6 + $0x1a0] sm:$0xff]  ;;  %v2200_v34 = vld [vmem:[%s3690_s6 + $0x190] sm:$0xff] }
 0x115   : > { %1099 = vmatpush.msra.mxu2 %v1070_v42  ;;  %1130 = vmatpush.msra.mxu3 %v1070_v42  ;;  %v2144_v42 = vld [vmem:[%s3690_s6 + $0xe0] sm:$0xff] }
 0x116   : > { %1471 = vmatpush.msra.mxu1 %v2186_v32  ;;  %2177 = vmatpush.msk.msra.mxu0 %vm974_vm4, %v2176_v40  ;;  %v2201_v32 = vld [vmem:[%s3690_s6 + $0x198] sm:$0xff] }
 0x117   : > { %1100 = vmatpush.msra.mxu2 %v1069_v46  ;;  %1131 = vmatpush.msra.mxu3 %v1069_v46  ;;  %v2183_v46 = vld [vmem:[%s3691_s7 + $0x120] sm:$0xff] }
 0x118   : > { %2099 = vmatmul.msk.f32.vlgmr.msra.gmra.mxu2 %vm1075_vm5, %v1073_v47  ;;  %2102 = vmatmul.msk.f32.vlgmr.msra.gmra.mxu3 %vm1075_vm5, %v1108_v48  ;;  %v2152_v47 = vld [vmem:[%s3691_s7 + $0xb0] sm:$0xff]  ;;  %v2174_v48 = vld [vmem:[%s3690_s6 + $0x148] sm:$0xff] }
 0x119   : > { %2118 = vmatpush.msk.msrb.mxu3 %vm974_vm4, %v1159_v49  ;;  %2115 = vmatpush.msk.msrb.mxu2 %vm974_vm4, %v2114_v50  ;;  %v2143_v49 = vld [vmem:[%s3690_s6 + $0xd8] sm:$0xff] }
 0x11a   : > { %1472 = vmatpush.msra.mxu1 %v2185_v36  ;;  %1428 = vmatpush.msra.mxu0 %v2175_v45  ;;  %v2182_v50 = vld [vmem:[%s3691_s7 + $0x118] sm:$0xff]  ;;  %v2199_v36 = vld [vmem:[%s3690_s6 + $0x188] sm:$0xff] }
 0x11b   : > { %1232 = vmatpush.msrb.mxu3 %v1158_v51  ;;  %1202 = vmatpush.msrb.mxu2 %v2113_v52  ;;  %v2173_v51 = vld [vmem:[%s3690_s6 + $0x140] sm:$0xff]  ;;  %v2142_v52 = vld [vmem:[%s3690_s6 + $0xd0] sm:$0xff] }
 0x11c   : > { %1473 = vmatpush.msra.mxu1 %v2184_v43  ;;  %1429 = vmatpush.msra.mxu0 %v2174_v48 }
 0x11d   : > { %1233 = vmatpush.msrb.mxu3 %v1157_v54  ;;  %1203 = vmatpush.msrb.mxu2 %v2112_v55  ;;  %v2181_v54 = vld [vmem:[%s3691_s7 + $0x110] sm:$0xff]  ;;  %v2172_v55 = vld [vmem:[%s3690_s6 + $0x138] sm:$0xff] }
 0x11e   : > { %1474 = vmatpush.msra.mxu1 %v2183_v46  ;;  %1430 = vmatpush.msra.mxu0 %v2173_v51  ;;  %v2194_v46 = vld [vmem:[%s3690_s6 + $0x160] sm:$0xff] }
 0x11f   : > { %1234 = vmatpush.msrb.mxu3 %v1156_v56  ;;  %1204 = vmatpush.msrb.mxu2 %v2111_v38  ;;  %v2141_v56 = vld [vmem:[%s3690_s6 + $0xc8] sm:$0xff] }
 0x120   : > { %2100 = vmatmul.msk.f32.gmra.mxu2 %vm1075_vm5, %v1074_v39  ;;  %2103 = vmatmul.msk.f32.gmra.mxu3 %vm1075_vm5, %v1109_v57  ;;  %v2180_v38 = vld [vmem:[%s3691_s7 + $0x108] sm:$0xff]  ;;  %v2171_v39 = vld [vmem:[%s3690_s6 + $0x130] sm:$0xff]  ;;  %v2140_v57 = vld [vmem:[%s3690_s6 + $0xc0] sm:$0xff] }
 0x121   : > { %1235 = vmatpush.msrb.mxu3 %v1155_v58  ;;  %1205 = vmatpush.msrb.mxu2 %v2110_v0  ;;  %v2170_v58 = vld [vmem:[%s3690_s6 + $0x128] sm:$0xff]  ;;  %v2138_v0 = vld [vmem:[%s3690_s6 + $0xb0] sm:$0xff] }
 0x122   : > { %1475 = vmatpush.msra.mxu1 %v2182_v50  ;;  %1431 = vmatpush.msra.mxu0 %v2172_v55 }
 0x123   : > { %1236 = vmatpush.msrb.mxu3 %v1154_v59  ;;  %1206 = vmatpush.msrb.mxu2 %v2109_v3  ;;  %v2313_v59 = vld [vmem:[%s3689_s5] ss:$0 sm:$0xff]  ;;  %v2167_v3 = vld [vmem:[%s3690_s6 + $0x110] sm:$0xff] }
 0x124   : > { %1476 = vmatpush.msra.mxu1 %v2181_v54  ;;  %1432 = vmatpush.msra.mxu0 %v2171_v39 }
 0x125   : > { %1237 = vmatpush.msrb.mxu3 %v1153_v60  ;;  %1207 = vmatpush.msrb.mxu2 %v2108_v8  ;;  %v2139_v60 = vld [vmem:[%s3690_s6 + $0xb8] sm:$0xff] }
 0x126   : > { %1477 = vmatpush.msra.mxu1 %v2180_v38  ;;  %1433 = vmatpush.msra.mxu0 %v2170_v58  ;;  %v2235_v58 = vld [vmem:[%s3695_s11 + $0x98] sm:$0xff] }
 0x127   : > { %1238 = vmatpush.msrb.mxu3 %v1152_v61  ;;  %1208 = vmatpush.msrb.mxu2 %v2107_v12  ;;  %v2169_v61 = vld [vmem:[%s3690_s6 + $0x120] sm:$0xff]  ;;  %v2217_v12 = vld [vmem:[%s3691_s7 + $0x1a8] sm:$0xff] }
 0x128   : > { %1434 = vmatpush.msra.mxu0 %v2169_v61  ;;  %v2233_v61 = vld [vmem:[%s3695_s11 + $0x88] sm:$0xff] }
 0x129   : > { %1239 = vmatpush.msrb.mxu3 %v1151_v62  ;;  %1209 = vmatpush.msrb.mxu2 %v2106_v16 }
 0x12b   : > { %1240 = vmatpush.msrb.mxu3 %v1150_v63  ;;  %1210 = vmatpush.msrb.mxu2 %v2105_v20 }
 0x12d   : > { %1241 = vmatpush.msrb.mxu3 %v1149_v1  ;;  %1211 = vmatpush.msrb.mxu2 %v2104_v24  ;;  %v2168_v1 = vld [vmem:[%s3690_s6 + $0x118] sm:$0xff]  ;;  %v2203_v24 = vld [vmem:[%s3690_s6 + $0x1a8] sm:$0xff] }
 0x12e   : > { %1435 = vmatpush.msra.mxu0 %v2168_v1 }
 0x12f   : > { %2163 = vmatpush.msk.msra.mxu3 %vm974_vm4, %v2162_v6  ;;  %2149 = vmatpush.msk.msra.mxu2 %vm974_vm4, %v2148_v28  ;;  %v2211_v28 = vld [vmem:[%s3691_s7 + $0x178] sm:$0xff] }
 0x130   : > { %1436 = vmatpush.msra.mxu0 %v2167_v3 }
 0x131   : > { %1381 = vmatpush.msra.mxu3 %v2161_v10  ;;  %1341 = vmatpush.msra.mxu2 %v2147_v31  ;;  %v2210_v31 = vld [vmem:[%s3691_s7 + $0x170] sm:$0xff] }
 0x132   : > { %1437 = vmatpush.msra.mxu0 %v2166_v5 }
 0x133   : > { %1382 = vmatpush.msra.mxu3 %v2160_v13  ;;  %1342 = vmatpush.msra.mxu2 %v2146_v35  ;;  %v2215_v13 = vld [vmem:[%s3691_s7 + $0x198] sm:$0xff]  ;;  %v2208_v35 = vld [vmem:[%s3691_s7 + $0x160] sm:$0xff] }
 0x135   : > { %1383 = vmatpush.msra.mxu3 %v2159_v17  ;;  %1343 = vmatpush.msra.mxu2 %v2145_v41  ;;  %v2197_v41 = vld [vmem:[%s3690_s6 + $0x178] sm:$0xff] }
 0x137   : > { %1384 = vmatpush.msra.mxu3 %v2158_v21  ;;  %1344 = vmatpush.msra.mxu2 %v2144_v42  ;;  %v2195_v42 = vld [vmem:[%s3690_s6 + $0x168] sm:$0xff] }
 0x139   : > { %1385 = vmatpush.msra.mxu3 %v2157_v25  ;;  %1345 = vmatpush.msra.mxu2 %v2143_v49 }
 0x13b   : > { %1386 = vmatpush.msra.mxu3 %v2156_v29  ;;  %1346 = vmatpush.msra.mxu2 %v2142_v52 }
 0x13d   : > { %1387 = vmatpush.msra.mxu3 %v2155_v33  ;;  %1347 = vmatpush.msra.mxu2 %v2141_v56  ;;  %v2209_v33 = vld [vmem:[%s3691_s7 + $0x168] sm:$0xff] }
 0x13f   : > { %1388 = vmatpush.msra.mxu3 %v2154_v37  ;;  %1348 = vmatpush.msra.mxu2 %v2140_v57  ;;  %v2198_v37 = vld [vmem:[%s3690_s6 + $0x180] sm:$0xff] }
 0x141   : > { %1389 = vmatpush.msra.mxu3 %v2153_v44  ;;  %1349 = vmatpush.msra.mxu2 %v2139_v60  ;;  %v2196_v44 = vld [vmem:[%s3690_s6 + $0x170] sm:$0xff] }
 0x143   : > { %1390 = vmatpush.msra.mxu3 %v2152_v47  ;;  %1350 = vmatpush.msra.mxu2 %v2138_v0  ;;  %v2232_v0 = vld [vmem:[%s3695_s11 + $0x80] sm:$0xff] }
 0x19b   : > { %v1102_v62 = vpop.f32.mrf.mxu2  ;;  %v1133_v63 = vpop.f32.mrf.mxu3 }
 0x19c   : > { %v1139_v53 = vmax.f32 %v1102_v62, %v1133_v63 }
 0x19e   : > { %v1145_v2 = vadd.f32 %v2313_v59, %v1139_v53 }
 0x1a0   : > { %2315 = vtanh.f32 %v1145_v2 }
 0x1a3   : > { %v1105_v6 = vpop.f32.mrf.mxu2  ;;  %v1136_v7 = vpop.f32.mrf.mxu3 }
 0x1a4   : > { %v1140_v8 = vmax.f32 %v1105_v6, %v1136_v7 }
 0x1a6   : > { %v3291_v10 = vpop.eup %2315  ;;  %v1146_v11 = vadd.f32 %v2313_v59, %v1140_v8  ;;  %v2234_v59 = vld [vmem:[%s3695_s11 + $0x90] sm:$0xff] }
 0x1a7   : > { %2119 = vmatmul.msk.f32.vlgmr.msrb.gmra.mxu3 %vm1188_vm6, %v3291_v10  ;;  %2136 = vmatmul.msk.f32.vlgmr.msrb.gmra.mxu1 %vm1188_vm6, %v3291_v10  ;;  %v1185_v16 = vrot.slane %v3291_v10, 1  ;;  %v1325_v25 = vrot.slane %v3291_v10, 2  ;;  %v1412_v27 = vrot.slane %v3291_v10, 3  ;;  %v1499_v43 = vrot.slane %v3291_v10, 4 }
 0x1a8   : > { %2317 = vtanh.f32 %v1146_v11  ;;  %2219 = vmatpush.msk.msrb.mxu3 %vm974_vm4, %v2218_v9 }
 0x1aa   : > { %1555 = vmatpush.msrb.mxu3 %v2217_v12 }
 0x1ac   : > { %1556 = vmatpush.msrb.mxu3 %v2216_v4 }
 0x1ae   : > { %v2318_v15 = vpop.eup %2317  ;;  %1557 = vmatpush.msrb.mxu3 %v2215_v13 }
 0x1af   : > { %2120 = vmatmul.msk.f32.gmra.mxu3 %vm1188_vm6, %v2318_v15  ;;  %2137 = vmatmul.msk.f32.gmra.mxu1 %vm1188_vm6, %v2318_v15  ;;  %v1186_v17 = vrot.slane %v2318_v15, 1  ;;  %v1326_v21 = vrot.slane %v2318_v15, 2  ;;  %v1413_v22 = vrot.slane %v2318_v15, 3  ;;  %v1500_v40 = vrot.slane %v2318_v15, 4 }
 0x1b0   : > { %1558 = vmatpush.msrb.mxu3 %v2214_v14 }
 0x1b1   : > { %v1187_v20 = vsel %vm591_vm0, %v1185_v16, %v1186_v17  ;;  %v1327_v29 = vsel %vm758_vm2, %v1325_v25, %v1326_v21  ;;  %v1414_v30 = vsel %vm866_vm3, %v1412_v27, %v1413_v22  ;;  %v1501_v45 = vsel %vm974_vm4, %v1499_v43, %v1500_v40  ;;  %v2231_v25 = vld [vmem:[%s3695_s11 + $0x78] sm:$0xff]  ;;  %v2230_v27 = vld [vmem:[%s3695_s11 + $0x70] sm:$0xff]  ;;  %v1641_v43 = vld [vmem:[%s3695_s11 + $0x28] sm:$0xff] }
 0x1b2   : > { %2116 = vmatmul.msk.f32.vlgmr.msrb.gmra.mxu2 %vm1188_vm6, %v1187_v20  ;;  %2133 = vmatmul.msk.f32.vlgmr.msrb.gmra.mxu0 %vm1188_vm6, %v1187_v20 }
 0x1b3   : > { %1559 = vmatpush.msrb.mxu3 %v2213_v18  ;;  %2205 = vmatpush.msk.msrb.mxu2 %vm974_vm4, %v2204_v19 }
 0x1b5   : > { %1560 = vmatpush.msrb.mxu3 %v2212_v23  ;;  %1515 = vmatpush.msrb.mxu2 %v2203_v24  ;;  %v1576_v23 = vld [vmem:[%s3692_s8] sm:$0x1f] }
 0x1b6   : > { %v1605_v24 = vld [vmem:[%s3693_s9] sm:$0x1f] }
 0x1b7   : > { %2164 = vmatmul.msk.f32.vlgmr.msra.gmra.mxu3 %vm1188_vm6, %v1327_v29  ;;  %2192 = vmatmul.msk.f32.vlgmr.msra.gmra.mxu1 %vm1188_vm6, %v1414_v30 }
 0x1b8   : > { %1561 = vmatpush.msrb.mxu3 %v2211_v28  ;;  %1516 = vmatpush.msrb.mxu2 %v2202_v26  ;;  %v1645_v28 = vld [vmem:[%s3695_s11 + $0x48] sm:$0xff] }
 0x1b9   : > { %v2229_v26 = vld [vmem:[%s3695_s11 + $0x68] sm:$0xff] }
 0x1ba   : > { %2117 = vmatmul.msk.f32.gmra.mxu2 %vm1188_vm6, %v1186_v17  ;;  %2134 = vmatmul.msk.f32.gmra.mxu0 %vm1188_vm6, %v1186_v17 }
 0x1bb   : > { %1562 = vmatpush.msrb.mxu3 %v2210_v31  ;;  %1517 = vmatpush.msrb.mxu2 %v2201_v32  ;;  %v2258_v31 = vld [vmem:[%s3695_s11 + $0x138] sm:$0xff]  ;;  %v2228_v32 = vld [vmem:[%s3695_s11 + $0x60] sm:$0xff] }
 0x1bd   : > { %1563 = vmatpush.msrb.mxu3 %v2209_v33  ;;  %1518 = vmatpush.msrb.mxu2 %v2200_v34  ;;  %v1643_v33 = vld [vmem:[%s3695_s11 + $0x38] sm:$0xff]  ;;  %v2246_v34 = vld [vmem:[%s3695_s11 + $0xe0] sm:$0xff] }
 0x1bf   : > { %2165 = vmatmul.msk.f32.gmra.mxu3 %vm1188_vm6, %v1326_v21  ;;  %2193 = vmatmul.msk.f32.gmra.mxu1 %vm1188_vm6, %v1413_v22 }
 0x1c0   : > { %1564 = vmatpush.msrb.mxu3 %v2208_v35  ;;  %1519 = vmatpush.msrb.mxu2 %v2199_v36  ;;  %v2257_v35 = vld [vmem:[%s3695_s11 + $0x130] sm:$0xff] }
 0x1c1   : > { %v1642_v36 = vld [vmem:[%s3695_s11 + $0x30] sm:$0xff] }
 0x1c2   : > { %2150 = vmatmul.msk.f32.vlgmr.msra.gmra.mxu2 %vm1188_vm6, %v1327_v29  ;;  %2178 = vmatmul.msk.f32.vlgmr.msra.gmra.mxu0 %vm1188_vm6, %v1414_v30  ;;  %v1644_v29 = vld [vmem:[%s3695_s11 + $0x40] sm:$0xff]  ;;  %v2247_v30 = vld [vmem:[%s3695_s11 + $0xe8] sm:$0xff] }
 0x1c3   : > { %1520 = vmatpush.msrb.mxu2 %v2198_v37  ;;  %1690 = vmatpush.msra.mxu3 %v1645_v28  ;;  %v2245_v37 = vld [vmem:[%s3695_s11 + $0xd8] sm:$0xff]  ;;  %v1817_v28 = vld [vmem:[%s3697_s13 + $0x28] sm:$0xff] }
 0x1c4   : > { %1724 = vmatpush.msrb.mxu0 %v2247_v30  ;;  %v1814_v30 = vld [vmem:[%s3697_s13 + $0x10] sm:$0xff] }
 0x1c5   : > { %1521 = vmatpush.msrb.mxu2 %v2197_v41  ;;  %1691 = vmatpush.msra.mxu3 %v1644_v29  ;;  %v2227_v41 = vld [vmem:[%s3695_s11 + $0x58] sm:$0xff] }
 0x1c6   : > { %1725 = vmatpush.msrb.mxu0 %v2246_v34  ;;  %v1815_v29 = vld [vmem:[%s3697_s13 + $0x18] sm:$0xff]  ;;  %v1864_v34 = vld [vmem:[%s3699_s15 + $0x70] sm:$0xff] }
 0x1c7   : > { %2220 = vmatmul.msk.f32.vlgmr.msrb.gmra.mxu3 %vm1188_vm6, %v1501_v45  ;;  %1522 = vmatpush.msrb.mxu2 %v2196_v44  ;;  %v2244_v44 = vld [vmem:[%s3695_s11 + $0xd0] sm:$0xff] }
 0x1c8   : > { %1692 = vmatpush.msra.mxu3 %v1643_v33  ;;  %1726 = vmatpush.msrb.mxu0 %v2245_v37  ;;  %v1865_v33 = vld [vmem:[%s3699_s15 + $0x78] sm:$0xff] }
 0x1c9   : > { %1523 = vmatpush.msrb.mxu2 %v2195_v42  ;;  %v2226_v42 = vld [vmem:[%s3695_s11 + $0x50] sm:$0xff]  ;;  %v1861_v37 = vld [vmem:[%s3699_s15 + $0x58] sm:$0xff] }
 0x1ca   : > { %2151 = vmatmul.msk.f32.gmra.mxu2 %vm1188_vm6, %v1326_v21  ;;  %2179 = vmatmul.msk.f32.gmra.mxu0 %vm1188_vm6, %v1413_v22 }
 0x1cb   : > { %1524 = vmatpush.msrb.mxu2 %v2194_v46  ;;  %1693 = vmatpush.msra.mxu3 %v1642_v36  ;;  %v2269_v46 = vld [vmem:[%s3695_s11 + $0x188] sm:$0xff]  ;;  %v1862_v36 = vld [vmem:[%s3699_s15 + $0x60] sm:$0xff] }
 0x1cc   : > { %1727 = vmatpush.msrb.mxu0 %v2244_v44 }
 0x1cd   : > { %1668 = vmatpush.msra.mxu2 %v2235_v58  ;;  %1694 = vmatpush.msra.mxu3 %v1641_v43  ;;  %v2252_v58 = vld [vmem:[%s3695_s11 + $0x108] sm:$0xff] }
 0x1cf   : > { %2221 = vmatmul.msk.f32.gmra.mxu3 %vm1188_vm6, %v1500_v40  ;;  %1669 = vmatpush.msra.mxu2 %v2234_v59  ;;  %v2265_v59 = vld [vmem:[%s3695_s11 + $0x168] sm:$0xff] }
 0x1d1   : > { %1670 = vmatpush.msra.mxu2 %v2233_v61  ;;  %v2251_v61 = vld [vmem:[%s3695_s11 + $0x100] sm:$0xff] }
 0x1d2   : > { %2206 = vmatmul.msk.f32.vlgmr.msrb.gmra.mxu2 %vm1188_vm6, %v1501_v45  ;;  %v2255_v45 = vld [vmem:[%s3695_s11 + $0x120] sm:$0xff] }
 0x1d3   : > { %1671 = vmatpush.msra.mxu2 %v2232_v0  ;;  %v2239_v0 = vld [vmem:[%s3695_s11 + $0xa8] sm:$0xff] }
 0x1d5   : > { %1672 = vmatpush.msra.mxu2 %v2231_v25  ;;  %v1819_v25 = vld [vmem:[%s3697_s13 + $0x38] sm:$0xff] }
 0x1d7   : > { %1673 = vmatpush.msra.mxu2 %v2230_v27  ;;  %v1818_v27 = vld [vmem:[%s3697_s13 + $0x30] sm:$0xff] }
 0x1d9   : > { %1674 = vmatpush.msra.mxu2 %v2229_v26  ;;  %v1816_v26 = vld [vmem:[%s3697_s13 + $0x20] sm:$0xff] }
 0x1da   : > { %2207 = vmatmul.msk.f32.gmra.mxu2 %vm1188_vm6, %v1500_v40  ;;  %v2256_v40 = vld [vmem:[%s3695_s11 + $0x128] sm:$0xff] }
 0x1db   : > { %1675 = vmatpush.msra.mxu2 %v2228_v32  ;;  %v1812_v32 = vld [vmem:[%s3697_s13] sm:$0xff] }
 0x1dd   : > { %1676 = vmatpush.msra.mxu2 %v2227_v41  ;;  %v1859_v41 = vld [vmem:[%s3699_s15 + $0x48] sm:$0xff] }
 0x1df   : > { %1677 = vmatpush.msra.mxu2 %v2226_v42 }
 0x1e1   : > { %1794 = vmatpush.msrb.mxu2 %v2269_v46 }
 0x224   : > { %v1307_v50 = vpop.f32.mrf.mxu1 }
 0x22a   : > { %v1243_v47 = vpop.f32.mrf.mxu3 }
 0x22c   : > { %v1310_v56 = vpop.f32.mrf.mxu1 }
 0x22f   : > { %v1281_v51 = vpop.f32.mrf.mxu0 }
 0x230   : > { %v1308_v5 = vadd.f32 %v1307_v50, %v1281_v51  ;;  %v2268_v50 = vld [vmem:[%s3695_s11 + $0x180] sm:$0xff]  ;;  %v1639_v51 = vld [vmem:[%s3695_s11 + $0x18] sm:$0xff] }
 0x231   : > { %1795 = vmatpush.msrb.mxu2 %v2268_v50 }
 0x232   : > { %v1246_v48 = vpop.f32.mrf.mxu3 }
 0x234   : > { %v1479_v60 = vpop.f32.mrf.mxu1 }
 0x235   : > { %v1213_v49 = vpop.f32.mrf.mxu2 }
 0x236   : > { %v1244_v1 = vadd.f32 %v1243_v47, %v1213_v49  ;;  %v1640_v47 = vld [vmem:[%s3695_s11 + $0x20] sm:$0xff]  ;;  %v2254_v49 = vld [vmem:[%s3695_s11 + $0x118] sm:$0xff] }
 0x237   : > { %v1284_v38 = vpop.f32.mrf.mxu0  ;;  %1695 = vmatpush.msra.mxu3 %v1640_v47  ;;  %v1857_v47 = vld [vmem:[%s3699_s15 + $0x38] sm:$0xff] }
 0x238   : > { %v1311_v2 = vadd.f32 %v1310_v56, %v1284_v38  ;;  %v2266_v56 = vld [vmem:[%s3695_s11 + $0x170] sm:$0xff]  ;;  %v1637_v38 = vld [vmem:[%s3695_s11 + $0x8] sm:$0xff] }
 0x239   : > { %1696 = vmatpush.msra.mxu3 %v1639_v51  ;;  %v1855_v51 = vld [vmem:[%s3699_s15 + $0x28] sm:$0xff] }
 0x23a   : > { %v1392_v52 = vpop.f32.mrf.mxu3 }
 0x23b   : > { %v1398_v9 = vadd.f32 %v1392_v52, %v1308_v5  ;;  %v2242_v52 = vld [vmem:[%s3695_s11 + $0xc0] sm:$0xff]  ;;  %v2262_v5 = vld [vmem:[%s3695_s11 + $0x150] sm:$0xff] }
 0x23c   : > { %v1482_v10 = vpop.f32.mrf.mxu1 }
 0x23d   : > { %v1216_v54 = vpop.f32.mrf.mxu2  ;;  %v1485_v16 = vadd.f32 %v1479_v60, %v1398_v9  ;;  %v2240_v60 = vld [vmem:[%s3695_s11 + $0xb0] sm:$0xff] }
 0x23e   : > { %v1247_v3 = vadd.f32 %v1246_v48, %v1216_v54  ;;  %v2243_v48 = vld [vmem:[%s3695_s11 + $0xc8] sm:$0xff]  ;;  %v2267_v54 = vld [vmem:[%s3695_s11 + $0x178] sm:$0xff]  ;;  %v1826_v9 = vld [vmem:[%s3697_s13 + $0x70] sm:$0xff] }
 0x23f   : > { %v1439_v62 = vpop.f32.mrf.mxu0  ;;  %1728 = vmatpush.msrb.mxu0 %v2243_v48  ;;  %1796 = vmatpush.msrb.mxu2 %v2267_v54 }
 0x241   : > { %1729 = vmatpush.msrb.mxu0 %v2242_v52  ;;  %1797 = vmatpush.msrb.mxu2 %v2266_v56 }
 0x242   : > { %v1395_v39 = vpop.f32.mrf.mxu3 }
 0x243   : > { %v1399_v6 = vadd.f32 %v1395_v39, %v1311_v2  ;;  %v2241_v39 = vld [vmem:[%s3695_s11 + $0xb8] sm:$0xff]  ;;  %1798 = vmatpush.msrb.mxu2 %v2265_v59  ;;  %v2249_v2 = vld [vmem:[%s3695_s11 + $0xf0] sm:$0xff] }
 0x244   : > { %1730 = vmatpush.msrb.mxu0 %v2241_v39  ;;  %v1852_v59 = vld [vmem:[%s3699_s15 + $0x10] sm:$0xff] }
 0x245   : > { %v1352_v55 = vpop.f32.mrf.mxu2  ;;  %v1486_v4 = vadd.f32 %v1482_v10, %v1399_v6  ;;  %v2261_v6 = vld [vmem:[%s3695_s11 + $0x148] sm:$0xff] }
 0x246   : > { %v1358_v7 = vadd.f32 %v1352_v55, %v1244_v1  ;;  %v1638_v55 = vld [vmem:[%s3695_s11 + $0x10] sm:$0xff]  ;;  %1731 = vmatpush.msrb.mxu0 %v2240_v60  ;;  %v2238_v1 = vld [vmem:[%s3695_s11 + $0xa0] sm:$0xff]  ;;  %v1851_v60 = vld [vmem:[%s3699_s15 + $0x8] sm:$0xff] }
 0x247   : > { %v1442_v11 = vpop.f32.mrf.mxu0  ;;  %1697 = vmatpush.msra.mxu3 %v1638_v55  ;;  %v1809_v55 = vld [vmem:[%s3696_s12] sm:$0x1] }
 0x248   : > { %v1445_v13 = vadd.f32 %v1439_v62, %v1358_v7  ;;  %v2264_v62 = vld [vmem:[%s3695_s11 + $0x160] sm:$0xff]  ;;  %1732 = vmatpush.msrb.mxu0 %v2239_v0 }
 0x249   : > { %1698 = vmatpush.msra.mxu3 %v1637_v38  ;;  %1799 = vmatpush.msrb.mxu2 %v2264_v62  ;;  %v2260_v7 = vld [vmem:[%s3695_s11 + $0x140] sm:$0xff] }
 0x24a   : > { %v1566_v63 = vpop.f32.mrf.mxu3  ;;  %1733 = vmatpush.msrb.mxu0 %v2238_v1  ;;  %v1828_v62 = vld [vmem:[%s3698_s14] sm:$0x1] }
 0x24b   : > { %v1572_v20 = vadd.f32 %v1566_v63, %v1485_v16  ;;  %v1636_v63 = vld [vmem:[%s3695_s11] sm:$0xff] }
 0x24c   : > { %1699 = vmatpush.msra.mxu3 %v1636_v63  ;;  %1867 = vmatpush.msra.mxu0 %v1865_v33  ;;  %v1866_v1 = vld [vmem:[%s3728_s16] sm:$0x1] }
 0x24d   : > { %v1355_v57 = vpop.f32.mrf.mxu2 }
 0x24e   : > { %v1359_v8 = vadd.f32 %v1355_v57, %v1247_v3  ;;  %v2253_v57 = vld [vmem:[%s3695_s11 + $0x110] sm:$0xff]  ;;  %v2263_v3 = vld [vmem:[%s3695_s11 + $0x158] sm:$0xff]  ;;  %1868 = vmatpush.msra.mxu0 %v1864_v34 }
 0x24f   : > { %1800 = vmatpush.msrb.mxu2 %v2263_v3 }
 0x250   : > { %v1446_v14 = vadd.f32 %v1442_v11, %v1359_v8  ;;  %v1827_v8 = vld [vmem:[%s3697_s13 + $0x78] sm:$0xff]  ;;  %v1825_v11 = vld [vmem:[%s3697_s13 + $0x68] sm:$0xff] }
 0x251   : > { %1801 = vmatpush.msrb.mxu2 %v2262_v5  ;;  %1829 = vmatpush.msrb.mxu3 %v1827_v8 }
 0x252   : > { %v1569_v12 = vpop.f32.mrf.mxu3 }
 0x253   : > { %v1573_v17 = vadd.f32 %v1569_v12, %v1486_v4  ;;  %1802 = vmatpush.msrb.mxu2 %v2261_v6  ;;  %1830 = vmatpush.msrb.mxu3 %v1826_v9  ;;  %v1824_v12 = vld [vmem:[%s3697_s13 + $0x60] sm:$0xff]  ;;  %v1823_v4 = vld [vmem:[%s3697_s13 + $0x58] sm:$0xff] }
 0x255   : > { %v1526_v53 = vpop.f32.mrf.mxu2  ;;  %1803 = vmatpush.msrb.mxu2 %v2260_v7  ;;  %1831 = vmatpush.msrb.mxu3 %v1825_v11 }
 0x256   : > { %v1532_v18 = vadd.f32 %v1526_v53, %v1445_v13  ;;  %v2250_v53 = vld [vmem:[%s3695_s11 + $0xf8] sm:$0xff]  ;;  %v1822_v13 = vld [vmem:[%s3697_s13 + $0x50] sm:$0xff] }
 0x257   : > { %1832 = vmatpush.msrb.mxu3 %v1824_v12 }
 0x258   : > { %v1574_v22 = vmax.f32 %v1532_v18, %v1572_v20 }
 0x259   : > { %1833 = vmatpush.msrb.mxu3 %v1823_v4 }
 0x25b   : > { %1834 = vmatpush.msrb.mxu3 %v1822_v13 }
 0x25d   : > { %v1529_v15 = vpop.f32.mrf.mxu2 }
 0x25e   : > { %v1533_v19 = vadd.f32 %v1529_v15, %v1446_v14  ;;  %v2314_v14 = vld [vmem:[%s3694_s10] ss:$0 sm:$0xff] }
 0x260   : > { %v1575_v21 = vmax.f32 %v1533_v19, %v1573_v17 }
 0x262   : > { %2222 = vmatpush.msk.msrb.mxu1 %vm1581_vm7, %v1575_v21 }
 0x264   : > { %1600 = vmatpush.msrb.mxu1 %v1574_v22 }
 0x265   : > { %2223 = vmatmul.msk.f32.vlgmr.msrb.gmra.mxu1 %vm1577_vm8, %v1576_v23  ;;  %v1821_v23 = vld [vmem:[%s3697_s13 + $0x48] sm:$0xff] }
 0x266   : > { %2224 = vmatpush.msk.msra.mxu1 %vm1581_vm7, %v1575_v21  ;;  %1835 = vmatpush.msrb.mxu3 %v1821_v23 }
 0x268   : > { %1624 = vmatpush.msra.mxu1 %v1574_v22 }
 0x26a   : > { %1759 = vmatpush.msrb.mxu1 %v2258_v31  ;;  %v1813_v31 = vld [vmem:[%s3697_s13 + $0x8] sm:$0xff] }
 0x26c   : > { %1760 = vmatpush.msrb.mxu1 %v2257_v35  ;;  %v1863_v35 = vld [vmem:[%s3699_s15 + $0x68] sm:$0xff] }
 0x26d   : > { %2225 = vmatmul.msk.f32.vlgmr.msra.gmra.mxu1 %vm1577_vm8, %v1605_v24  ;;  %v1820_v24 = vld [vmem:[%s3697_s13 + $0x40] sm:$0xff]  ;;  %1869 = vmatpush.msra.mxu0 %v1863_v35 }
 0x26e   : > { %1761 = vmatpush.msrb.mxu1 %v2256_v40  ;;  %1836 = vmatpush.msrb.mxu3 %v1820_v24  ;;  %v1860_v40 = vld [vmem:[%s3699_s15 + $0x50] sm:$0xff] }
 0x26f   : > { %1870 = vmatpush.msra.mxu0 %v1862_v36 }
 0x270   : > { %1762 = vmatpush.msrb.mxu1 %v2255_v45  ;;  %1837 = vmatpush.msrb.mxu3 %v1819_v25  ;;  %v1858_v45 = vld [vmem:[%s3699_s15 + $0x40] sm:$0xff] }
 0x271   : > { %1871 = vmatpush.msra.mxu0 %v1861_v37 }
 0x272   : > { %1763 = vmatpush.msrb.mxu1 %v2254_v49  ;;  %1838 = vmatpush.msrb.mxu3 %v1818_v27  ;;  %v1856_v49 = vld [vmem:[%s3699_s15 + $0x30] sm:$0xff] }
 0x273   : > { %1872 = vmatpush.msra.mxu0 %v1860_v40 }
 0x274   : > { %1764 = vmatpush.msrb.mxu1 %v2253_v57  ;;  %1839 = vmatpush.msrb.mxu3 %v1817_v28  ;;  %v1854_v57 = vld [vmem:[%s3699_s15 + $0x20] sm:$0xff] }
 0x275   : > { %1873 = vmatpush.msra.mxu0 %v1859_v41 }
 0x276   : > { %1765 = vmatpush.msrb.mxu1 %v2252_v58  ;;  %1840 = vmatpush.msrb.mxu3 %v1816_v26  ;;  %v1853_v58 = vld [vmem:[%s3699_s15 + $0x18] sm:$0xff] }
 0x277   : > { %1874 = vmatpush.msra.mxu0 %v1858_v45 }
 0x278   : > { %1766 = vmatpush.msrb.mxu1 %v2251_v61  ;;  %1841 = vmatpush.msrb.mxu3 %v1815_v29  ;;  %v1850_v61 = vld [vmem:[%s3699_s15] sm:$0xff] }
 0x279   : > { %1875 = vmatpush.msra.mxu0 %v1857_v47 }
 0x27a   : > { %1767 = vmatpush.msrb.mxu1 %v2250_v53  ;;  %1842 = vmatpush.msrb.mxu3 %v1814_v30 }
 0x27b   : > { %1876 = vmatpush.msra.mxu0 %v1856_v49 }
 0x27c   : > { %1768 = vmatpush.msrb.mxu1 %v2249_v2  ;;  %1843 = vmatpush.msrb.mxu3 %v1813_v31 }
 0x27d   : > { %1877 = vmatpush.msra.mxu0 %v1855_v51 }
 0x27e   : > { %1844 = vmatpush.msrb.mxu3 %v1812_v32 }
 0x27f   : > { %1878 = vmatpush.msra.mxu0 %v1854_v57 }
 0x281   : > { %1879 = vmatpush.msra.mxu0 %v1853_v58 }
 0x283   : > { %1880 = vmatpush.msra.mxu0 %v1852_v59 }
 0x285   : > { %1881 = vmatpush.msra.mxu0 %v1851_v60 }
 0x287   : > { %1882 = vmatpush.msra.mxu0 %v1850_v61 }
 0x2e2   : > { %v1602_v10 = vpop.f32.mrf.mxu1 }
 0x2ea   : > { %v1626_v15 = vpop.f32.mrf.mxu1 }
 0x2eb   : > { %v1629_v16 = vmax.f32 %v1602_v10, %v1626_v15 }
 0x2ed   : > { %v1634_v17 = vadd.f32 %v2314_v14, %v1629_v16 }
 0x2ef   : > { %2319 = vtanh.f32 %v1634_v17 }
 0x2f5   : > { %v2320_v18 = vpop.eup %2319 }
 0x2f6   : > { %v1658_v19 = vrot.slane %v2320_v18, 1  ;;  %2237 = vmatmul.msk.f32.vlgmr.msra.gmra.mxu3 %vm1659_vm9, %v2320_v18  ;;  %v1715_v20 = vrot.slane %v2320_v18, 2  ;;  %v1750_v21 = vrot.slane %v2320_v18, 3  ;;  %v1785_v22 = vrot.slane %v2320_v18, 4 }
 0x2f8   : > { %2236 = vmatmul.msk.f32.vlgmr.msra.gmra.mxu2 %vm1659_vm9, %v1658_v19  ;;  %2248 = vmatmul.msk.f32.vlgmr.msrb.gmra.mxu0 %vm1659_vm9, %v1715_v20 }
 0x2f9   : > { %2259 = vmatmul.msk.f32.vlgmr.msrb.gmra.mxu1 %vm1659_vm9, %v1750_v21 }
 0x300   : > { %2270 = vmatmul.msk.f32.vlgmr.msrb.gmra.mxu2 %vm1659_vm9, %v1785_v22 }
 0x375   : > { %v1735_v46 = vpop.f32.mrf.mxu0 }
 0x376   : > { %v1770_v50 = vpop.f32.mrf.mxu1 }
 0x379   : > { %v1701_v44 = vpop.f32.mrf.mxu3 }
 0x37b   : > { %v1679_v43 = vpop.f32.mrf.mxu2 }
 0x37c   : > { %v1702_v42 = vadd.f32 %v1701_v44, %v1679_v43 }
 0x37e   : > { %v1738_v48 = vadd.f32 %v1735_v46, %v1702_v42 }
 0x380   : > { %v1773_v52 = vadd.f32 %v1770_v50, %v1738_v48 }
 0x383   : > { %v1805_v54 = vpop.f32.mrf.mxu2 }
 0x384   : > { %v1808_v56 = vadd.f32 %v1805_v54, %v1773_v52 }
 0x386   : > { %v1810_v38 = vadd.f32 %v1809_v55, %v1808_v56 }
 0x388   : > { %2321 = vtanh.f32 %v1810_v38 }
 0x38e   : > { %v2322_v39 = vpop.eup %2321 }
 0x38f   : > { %1845 = vmatmul.f32.vlgmr.msrb.gmra.mxu3 %v2322_v39 }
 0x412   : > { %v1846_v63 = vpop.f32.mrf.mxu3 }
 0x413   : > { %v1847_v0 = vadd.f32 %v1846_v63, %v1828_v62 }
 0x415   : > { %2323 = vtanh.f32 %v1847_v0 }
 0x41b   : > { %v2324_v53 = vpop.eup %2323 }
 0x41c   : > { %1883 = vmatmul.f32.vlgmr.msra.gmra.mxu0 %v2324_v53 }
 0x499   : > { %v1884_v2 = vpop.f32.mrf.mxu0 }
 0x49a   : > { %v1885_v3 = vadd.f32 %v1884_v2, %v1866_v1 }
 0x49c   : > { %1887 = vst [vmem:[%s540_s30] sm:$0x1] %v1885_v3 }
 0x49d   : > { %2352 = shalt.err (!%p2349_p3)
}
 0x49e   : > { %2274 = dma.vmem_to_hbm [thread:$0]  (%p2517_p5), %s1900_s19, 16, %s1902_s27, %s1889_s18  }
 0x49f PF: > { %s3729_s24 = sld [smem:[#allocation7_spill]] }
 0x4a0   : > { %s3730_s22 = sld [smem:[#allocation5_spill]] }
 0x4a5   : > { %p2280_p4 = scmp.ge.s32.totalorder %s3729_s24, 2 }
 0x4a6   : > { %s1913_s30 = sand.u32 1, %s3730_s22  }
 0x4a7   : > { %p2277_p7 = pnand %p2280_p4, %p2521_p6  ;;  %s1914_s28 = scalar_lea.sflag [#allocation3], %s1913_s30 }
 0x4a9   : > { %p2278_p8 = pneg %p2277_p7 }
 0x4ab   : > { %2370 = dma.done.wait (%p2278_p8), %s1914_s28, 16  }
 0x4ac   : > { %2372 = vsyncadd (%p2278_p8), %s1914_s28, 4294967280  ;;  %s3732_s27 = sld [smem:[#allocation8_spill]]  ;;  %s3735_s24 = smov %s2379_s25 }
 0x4ad   : > { %s3733_s2 = sld [smem:[#allocation6_spill]] }
 0x4ae   : > { %s3734_s26 = sld [smem:[#allocation9_spill]] }
 0x4b2   : > { %p27_p9 = scmp.ge.s32.totalorder %s3732_s27, 4  }
 0x4b3   : > { %s3736_s25 = smov %s3733_s2 }
 0x4b4   :  { %29 = sbr.rel (!%p27_p9) target bundleno = 8 (0x8), region = 143 }
 0x4b9   :  { %1919 = vsyncpa [#allocation3], 1 }
 0x4ba   :  { %1921 = vsyncpa [#allocation3 + $0x1], 1 }

</bundles_post_ra>
